<compile_context>
chip_gen: v6e
topology: v6e:2x2x1
jax: 0.10.0
libtpu: 0.0.40
codegen_flags: <defaults>
</compile_context>

<pallas_src>
import jax
import jax.numpy as jnp
from jax.experimental import pallas as pl
from jax.experimental.pallas import tpu as pltpu

# Packed-lane layout constants.
NZ = 20        # latent size (out_channels of the heads)
MU_OFF = 0     # mu lives in lanes [0, 20)
LV_OFF = 64    # logvar lives in lanes [64, 84)  (half-vreg offset -> cheap roll)
K0, K0P = 784, 1024    # fc1 input dim, padded to a 256-multiple
K1, K1P = 400, 512     # fc1 output dim, padded to a 256-multiple
NHP = 128              # packed head width (one full lane tile)


def _round_up(n, m):
    return (n + m - 1) // m * m


def encoder_kernel(x_ref, w1_ref, b1_ref, wh_ref, bh_ref, noise_ref,
                   head_ref, z_ref):
    # fc1 + ReLU: bf16 MXU operands, f32 accumulate, f32 VPU math.
    h = jnp.dot(x_ref[...], w1_ref[...], preferred_element_type=jnp.float32)
    h = jnp.maximum(h + b1_ref[...], 0.0)                      # (TB, 512) f32

    # Fused heads: one (512 x 128) matmul; mu at lanes 0:20, logvar at 64:84.
    head = jnp.dot(h.astype(wh_ref.dtype), wh_ref[...],
                   preferred_element_type=jnp.float32) + bh_ref[...]   # (TB,128) f32

    # Reparameterize lane-dense: XLU roll brings logvar into mu's lanes,
    # noise is zero outside lanes 0:20 so the other lanes stay finite.
    lv_aligned = pltpu.roll(head, shift=64, axis=1)            # logvar -> lanes 0:20
    z = head + noise_ref[...] * jnp.exp(lv_aligned * 0.5)      # z valid in lanes 0:20

    # Two 128-lane unmasked stores (no vst.msk partial stores).
    head_ref[...] = head
    z_ref[...] = z


def pack_params(params):
    """One-time padding / fusing of the PyTorch-style parameters."""
    w1, b1, w2, b2, w3, b3 = params   # w stored as (in, out), b as (1, out)

    w1p = (jnp.zeros((K0P, K1P), jnp.float32)
           .at[:K0, :K1].set(w1).astype(jnp.bfloat16))
    b1p = jnp.zeros((1, K1P), jnp.float32).at[:, :K1].set(b1)

    whp = (jnp.zeros((K1P, NHP), jnp.float32)
           .at[:K1, MU_OFF:MU_OFF + NZ].set(w2)
           .at[:K1, LV_OFF:LV_OFF + NZ].set(w3).astype(jnp.bfloat16))
    bhp = (jnp.zeros((1, NHP), jnp.float32)
           .at[:, MU_OFF:MU_OFF + NZ].set(b2)
           .at[:, LV_OFF:LV_OFF + NZ].set(b3))
    return w1p, b1p, whp, bhp


def encoder_min_forward(x_nchw, packed, noise, *, tile_b_max=256):
    w1p, b1p, whp, bhp = packed
    b = x_nchw.shape[0]
    x_flat = x_nchw.reshape(b, -1).astype(jnp.float32)          # x.view(b, 784)

    # Batch tiling: multiple of 16 rows (bf16 sublane packing), tiled for big B.
    tile_b = min(tile_b_max, _round_up(b, 16))
    b_pad = _round_up(b, tile_b)

    x_pad = (jnp.zeros((b_pad, K0P), jnp.float32)
             .at[:b, :K0].set(x_flat).astype(jnp.bfloat16))
    noise_pad = (jnp.zeros((b_pad, NHP), jnp.float32)
                 .at[:b, MU_OFF:MU_OFF + NZ].set(noise))

    grid = (b_pad // tile_b,)
    row = lambda i: (i, 0)    # batch-tiled arrays
    rep = lambda i: (0, 0)    # weights: constant block -> stay resident in VMEM

    head_slab, z_slab = pl.pallas_call(
        encoder_kernel,
        out_shape=(
            jax.ShapeDtypeStruct((b_pad, NHP), jnp.float32),   # [mu | logvar] slab
            jax.ShapeDtypeStruct((b_pad, NHP), jnp.float32),   # z slab
        ),
        grid_spec=pltpu.PrefetchScalarGridSpec(
            num_scalar_prefetch=0,
            grid=grid,
            in_specs=[
                pl.BlockSpec((tile_b, K0P), row),   # x
                pl.BlockSpec((K0P, K1P), rep),      # W1
                pl.BlockSpec((1, K1P), rep),        # b1
                pl.BlockSpec((K1P, NHP), rep),      # fused head weight
                pl.BlockSpec((1, NHP), rep),        # fused head bias
                pl.BlockSpec((tile_b, NHP), row),   # noise
            ],
            out_specs=(
                pl.BlockSpec((tile_b, NHP), row),
                pl.BlockSpec((tile_b, NHP), row),
            ),
        ),
        compiler_params=pltpu.CompilerParams(
            dimension_semantics=("parallel",),      # shard batch tiles across TCs (v7x)
        ),
        cost_estimate=pl.CostEstimate(
            flops=2 * b_pad * (K0P * K1P + K1P * NHP),
            transcendentals=b_pad * NHP,
            bytes_accessed=(w1p.size * 2 + whp.size * 2 + x_pad.size * 2
                            + noise_pad.size * 4 + 2 * b_pad * NHP * 4),
        ),
    )(x_pad, w1p, b1p, whp, bhp, noise_pad)

    mu = head_slab[:b, MU_OFF:MU_OFF + NZ]
    logvar = head_slab[:b, LV_OFF:LV_OFF + NZ]
    z = z_slab[:b, MU_OFF:MU_OFF + NZ]
    return z, mu, logvar


def init_params(key):
    # Deterministic, PyTorch-Linear-like uniform init (shapes from module __init__).
    k1, k2, k3, k4, k5, k6 = jax.random.split(key, 6)

    def lin(kw, kb, fan_in, fan_out):
        bound = 1.0 / jnp.sqrt(fan_in)
        w = jax.random.uniform(kw, (fan_in, fan_out), jnp.float32, -bound, bound)
        b = jax.random.uniform(kb, (1, fan_out), jnp.float32, -bound, bound)
        return w, b

    w1, b1 = lin(k1, k2, 784, 400)   # fc1
    w2, b2 = lin(k3, k4, 400, 20)    # fc2 (mu head)
    w3, b3 = lin(k5, k6, 400, 20)    # fc3 (logvar head)
    return (w1, b1, w2, b2, w3, b3)


if __name__ == "__main__":
    key = jax.random.PRNGKey(0)
    k_param, k_x, k_noise = jax.random.split(key, 3)

    # Small shapes consistent with the module: B=2, C=1, H=W=28 -> 784 features.
    B, C, H, W = 2, 1, 28, 28
    x = jax.random.normal(k_x, (B, C, H, W), jnp.float32)

    params = init_params(k_param)
    packed = pack_params(params)
    # torch.randn_like(mu): noise generated deterministically here and fed to the kernel.
    noise = jax.random.normal(k_noise, (B, NZ), jnp.float32)

    z, mu, logvar = encoder_min_forward(x, packed, noise)
    jax.block_until_ready((z, mu, logvar))

    # Sanity check against pure-JAX f32 reference (loose tol: bf16 MXU operands).
    x_flat = x.reshape(B, 784)
    w1, b1, w2, b2, w3, b3 = params
    h_ref = jnp.maximum(x_flat @ w1 + b1, 0.0)
    mu_ref = h_ref @ w2 + b2
    lv_ref = h_ref @ w3 + b3
    z_ref = mu_ref + noise * jnp.exp(lv_ref * 0.5)
    assert jnp.allclose(mu, mu_ref, atol=5e-2), "mu mismatch"
    assert jnp.allclose(logvar, lv_ref, atol=5e-2), "logvar mismatch"
    assert jnp.allclose(z, z_ref, atol=5e-2), "z mismatch"

    print("KERNEL_OK")
</pallas_src>

<mosaic_0001>
module attributes {stable_mosaic.version = 11 : i64} {
  func.func @encoder_kernel(%arg0: i32, %arg1: memref<16x1024xbf16, #tpu.memory_space<vmem>>, %arg2: memref<1024x512xbf16, #tpu.memory_space<vmem>>, %arg3: memref<1x512xf32, #tpu.memory_space<vmem>>, %arg4: memref<512x128xbf16, #tpu.memory_space<vmem>>, %arg5: memref<1x128xf32, #tpu.memory_space<vmem>>, %arg6: memref<16x128xf32, #tpu.memory_space<vmem>>, %arg7: memref<16x128xf32, #tpu.memory_space<vmem>>, %arg8: memref<16x128xf32, #tpu.memory_space<vmem>>) attributes {dimension_semantics = [#tpu.dimension_semantics<parallel>], iteration_bounds = array<i64: 1>, scalar_prefetch = 0 : i64, scratch_operands = 0 : i64, tpu.core_type = #tpu.core_type<tc>, window_params = [{transform_indices = @transform_0, window_bounds = array<i64: 16, 1024>}, {pipeline_mode = #tpu.pipeline_mode<synchronous>, transform_indices = @transform_1, window_bounds = array<i64: 1024, 512>}, {pipeline_mode = #tpu.pipeline_mode<synchronous>, transform_indices = @transform_2, window_bounds = array<i64: 1, 512>}, {pipeline_mode = #tpu.pipeline_mode<synchronous>, transform_indices = @transform_3, window_bounds = array<i64: 512, 128>}, {pipeline_mode = #tpu.pipeline_mode<synchronous>, transform_indices = @transform_4, window_bounds = array<i64: 1, 128>}, {transform_indices = @transform_5, window_bounds = array<i64: 16, 128>}, {transform_indices = @transform_6, window_bounds = array<i64: 16, 128>}, {transform_indices = @transform_7, window_bounds = array<i64: 16, 128>}]} {
    %c0 = arith.constant 0 : index
    %c0_0 = arith.constant 0 : index
    %0 = vector.load %arg1[%c0, %c0_0] : memref<16x1024xbf16, #tpu.memory_space<vmem>>, vector<16x1024xbf16>
    %c0_1 = arith.constant 0 : index
    %c0_2 = arith.constant 0 : index
    %1 = vector.load %arg2[%c0_1, %c0_2] : memref<1024x512xbf16, #tpu.memory_space<vmem>>, vector<1024x512xbf16>
    %cst = arith.constant dense<0.000000e+00> : vector<16x512xf32>
    %2 = tpu.matmul %0, %1, %cst {dimension_numbers = #tpu.dot_dimension_numbers<[1], [0], [0], [1], [0, 0, 1, 1], [], []>} : vector<16x1024xbf16>, vector<1024x512xbf16>, vector<16x512xf32> -> vector<16x512xf32>
    %c0_3 = arith.constant 0 : index
    %c0_4 = arith.constant 0 : index
    %3 = vector.load %arg3[%c0_3, %c0_4] : memref<1x512xf32, #tpu.memory_space<vmem>>, vector<1x512xf32>
    %4 = vector.broadcast %3 : vector<1x512xf32> to vector<16x512xf32>
    %5 = arith.addf %2, %4 : vector<16x512xf32>
    %cst_5 = arith.constant 0.000000e+00 : f32
    %6 = vector.broadcast %cst_5 : f32 to vector<16x512xf32>
    %7 = arith.maximumf %5, %6 : vector<16x512xf32>
    %8 = arith.truncf %7 : vector<16x512xf32> to vector<16x512xbf16>
    %c0_6 = arith.constant 0 : index
    %c0_7 = arith.constant 0 : index
    %9 = vector.load %arg4[%c0_6, %c0_7] : memref<512x128xbf16, #tpu.memory_space<vmem>>, vector<512x128xbf16>
    %cst_8 = arith.constant dense<0.000000e+00> : vector<16x128xf32>
    %10 = tpu.matmul %8, %9, %cst_8 {dimension_numbers = #tpu.dot_dimension_numbers<[1], [0], [0], [1], [0, 0, 1, 1], [], []>} : vector<16x512xbf16>, vector<512x128xbf16>, vector<16x128xf32> -> vector<16x128xf32>
    %c0_9 = arith.constant 0 : index
    %c0_10 = arith.constant 0 : index
    %11 = vector.load %arg5[%c0_9, %c0_10] : memref<1x128xf32, #tpu.memory_space<vmem>>, vector<1x128xf32>
    %12 = vector.broadcast %11 : vector<1x128xf32> to vector<16x128xf32>
    %13 = arith.addf %10, %12 : vector<16x128xf32>
    %c64_i32 = arith.constant 64 : i32
    %14 = tpu.dynamic_rotate %13 by %c64_i32 dim 1 : vector<16x128xf32>, i32 -> vector<16x128xf32>
    %c0_11 = arith.constant 0 : index
    %c0_12 = arith.constant 0 : index
    %15 = vector.load %arg6[%c0_11, %c0_12] : memref<16x128xf32, #tpu.memory_space<vmem>>, vector<16x128xf32>
    %cst_13 = arith.constant 5.000000e-01 : f32
    %16 = vector.broadcast %cst_13 : f32 to vector<16x128xf32>
    %17 = arith.mulf %14, %16 : vector<16x128xf32>
    %18 = math.exp %17 : vector<16x128xf32>
    %19 = arith.mulf %15, %18 : vector<16x128xf32>
    %20 = arith.addf %13, %19 : vector<16x128xf32>
    %c0_14 = arith.constant 0 : index
    %c0_15 = arith.constant 0 : index
    %21 = vector.load %arg7[%c0_14, %c0_15] : memref<16x128xf32, #tpu.memory_space<vmem>>, vector<16x128xf32>
    tpu.vector_store %arg7[%c0_14, %c0_15], %13 {strides = array<i32>} : memref<16x128xf32, #tpu.memory_space<vmem>>, vector<16x128xf32>,
    %c0_16 = arith.constant 0 : index
    %c0_17 = arith.constant 0 : index
    %22 = vector.load %arg8[%c0_16, %c0_17] : memref<16x128xf32, #tpu.memory_space<vmem>>, vector<16x128xf32>
    tpu.vector_store %arg8[%c0_16, %c0_17], %20 {strides = array<i32>} : memref<16x128xf32, #tpu.memory_space<vmem>>, vector<16x128xf32>,
    return
  }
  func.func @transform_0(%arg0: i32) -> (i32, i32) {
    %c0_i32 = arith.constant 0 : i32
    %c0_i32_0 = arith.constant 0 : i32
    return %arg0, %c0_i32 : i32, i32
  }
  func.func @transform_1(%arg0: i32) -> (i32, i32) {
    %c0_i32 = arith.constant 0 : i32
    %c0_i32_0 = arith.constant 0 : i32
    %c0_i32_1 = arith.constant 0 : i32
    return %c0_i32, %c0_i32_0 : i32, i32
  }
  func.func @transform_2(%arg0: i32) -> (i32, i32) {
    %c0_i32 = arith.constant 0 : i32
    %c0_i32_0 = arith.constant 0 : i32
    %c0_i32_1 = arith.constant 0 : i32
    return %c0_i32, %c0_i32_0 : i32, i32
  }
  func.func @transform_3(%arg0: i32) -> (i32, i32) {
    %c0_i32 = arith.constant 0 : i32
    %c0_i32_0 = arith.constant 0 : i32
    %c0_i32_1 = arith.constant 0 : i32
    return %c0_i32, %c0_i32_0 : i32, i32
  }
  func.func @transform_4(%arg0: i32) -> (i32, i32) {
    %c0_i32 = arith.constant 0 : i32
    %c0_i32_0 = arith.constant 0 : i32
    %c0_i32_1 = arith.constant 0 : i32
    return %c0_i32, %c0_i32_0 : i32, i32
  }
  func.func @transform_5(%arg0: i32) -> (i32, i32) {
    %c0_i32 = arith.constant 0 : i32
    %c0_i32_0 = arith.constant 0 : i32
    return %arg0, %c0_i32 : i32, i32
  }
  func.func @transform_6(%arg0: i32) -> (i32, i32) {
    %c0_i32 = arith.constant 0 : i32
    %c0_i32_0 = arith.constant 0 : i32
    return %arg0, %c0_i32 : i32, i32
  }
  func.func @transform_7(%arg0: i32) -> (i32, i32) {
    %c0_i32 = arith.constant 0 : i32
    %c0_i32_0 = arith.constant 0 : i32
    return %arg0, %c0_i32 : i32, i32
  }
}

</mosaic_0001>

<bundles_post_ra>
// kernel: tpu_custom_call.1
= control target key start
LH: loop header
LB: loop body
LE: loop exit
PB: predicated region body
PF: predicated region fallthrough
CT: control target
= control target key end

     0   :  { %13 = vsyncpa [#allocation3], 0  ;;  %s3534_s0 = inlined_call_operand.hbm [shape: bf16[16,1024], index: 0, kind: input, shape index: {}]   ;;  %s3535_s1 = inlined_call_operand.hbm [shape: bf16[1024,512], index: 1, kind: input, shape index: {}]   ;;  %s3536_s2 = inlined_call_operand.hbm [shape: f32[1,512], index: 2, kind: input, shape index: {}]   ;;  %s3537_s3 = inlined_call_operand.hbm [shape: bf16[512,128], index: 3, kind: input, shape index: {}]   ;;  %s3538_s4 = inlined_call_operand.vmem [shape: f32[1,128], index: 4, kind: input, shape index: {}]   ;;  %s3539_s5 = inlined_call_operand.hbm [shape: f32[16,128], index: 5, kind: input, shape index: {}]   ;;  %s3540_s6 = inlined_call_operand.hbm [shape: f32[16,128], index: 6, kind: output, shape index: {0}]   ;;  %s3541_s7 = inlined_call_operand.hbm [shape: f32[16,128], index: 7, kind: output, shape index: {1}]  }
   0x1   :  { %14 = vsyncpa [#allocation6], 0 }
   0x2   :  { %15 = vsyncpa [#allocation9], 0 }
   0x3   :  { %16 = vsyncpa [#allocation4], 0 }
   0x4   :  { %17 = vsyncpa [#allocation13], 0  ;;  %s3382_s24 = smov [#allocation5]  }
   0x5   :  { %s35_s25 = sshll.u32 %s3382_s24, 4  ;;  %s36_s25 = int_to_ptr.vmem [resolvable:$true] %s35_s25 }
   0x6   :  { %s3240_s26 = scalar_lea.vmem %s36_s25, 32768  ;;  %p3245_p1 = scmp.lt.s32.totalorder %s36_s25, %s36_s25 }
   0x7   :  { %p3241_p0 = scmp.ne.s32.totalorder %s36_s25, %s3240_s26  ;;  %p3246_p2 = scmp.lt.s32.totalorder %s3240_s26, %s3240_s26 }
   0x9   :  { %p3247_p3 = por %p3246_p2, %p3245_p1 }
   0xb   :  { %p3248_p4 = pnand %p3247_p3, %p3241_p0 }
   0xd   :  { %3251 = shalt.err (!%p3248_p4)
}
   0xe   :  { %s3383_s27 = smov 256   ;;  %s3384_s28 = smov 16  }
   0xf   :  { %41 = dma.hbm_to_vmem [thread:$0]  %s3535_s1, 32768, %s36_s25, [#allocation6], %s3383_s27, %s3383_s27, %s3384_s28  }
  0x10   :  { %s3385_s8 = smov [#allocation8]  }
  0x11   :  { %s57_s9 = sshll.u32 %s3385_s8, 4  ;;  %s58_s9 = int_to_ptr.vmem [resolvable:$true] %s57_s9 }
  0x12   :  { %s3260_s10 = scalar_lea.vmem %s58_s9, 4096  ;;  %p3265_p6 = scmp.lt.s32.totalorder %s58_s9, %s58_s9 }
  0x13   :  { %p3261_p5 = scmp.ne.s32.totalorder %s58_s9, %s3260_s10  ;;  %p3266_p7 = scmp.lt.s32.totalorder %s3260_s10, %s3260_s10 }
  0x15   :  { %p3267_p8 = por %p3266_p7, %p3265_p6 }
  0x17   :  { %p3268_p9 = pnand %p3267_p8, %p3261_p5 }
  0x19   :  { %3271 = shalt.err (!%p3268_p9)
}
  0x1a   :  { %s3386_s11 = smov 64   ;;  %s3387_s12 = smov 4  }
  0x1b   :  { %63 = dma.hbm_to_vmem [thread:$0]  %s3537_s3, 4096, %s58_s9, [#allocation9], %s3386_s11, %s3386_s11, %s3387_s12  }
  0x1c   :  { %s3388_s15 = smov [#allocation2]  }
  0x1d   :  { %s23_s1 = sshll.u32 %s3388_s15, 4  ;;  %s24_s1 = int_to_ptr.vmem [resolvable:$true] %s23_s1 }
  0x1e   :  { %s3280_s16 = scalar_lea.vmem %s24_s1, 1024  ;;  %p3285_p11 = scmp.lt.s32.totalorder %s24_s1, %s24_s1 }
  0x1f   :  { %p3281_p10 = scmp.ne.s32.totalorder %s24_s1, %s3280_s16  ;;  %p3286_p12 = scmp.lt.s32.totalorder %s3280_s16, %s3280_s16 }
  0x21   :  { %p3287_p13 = por %p3286_p12, %p3285_p11 }
  0x23   :  { %p3288_p0 = pnand %p3287_p13, %p3281_p10 }
  0x25   :  { %3291 = shalt.err (!%p3288_p0)
}
  0x26   :  { %s3389_s17 = smov 512   ;;  %s3390_s18 = smov 32  }
  0x27   :  { %29 = dma.hbm_to_vmem [thread:$0]  %s3534_s0, 1024, %s24_s1, [#allocation3], %s3389_s17, %s3389_s17, %s3390_s18  }
  0x28   :  { %s3391_s21 = smov [#allocation7]   ;;  %s3392_s3 = smov [#allocation10]  }
  0x29   :  { %s48_s22 = sshll.u32 %s3391_s21, 4  ;;  %s71_s23 = sshll.u32 %s3392_s3, 4  ;;  %s49_s22 = int_to_ptr.vmem [resolvable:$true] %s48_s22  ;;  %s72_s23 = int_to_ptr.vmem [resolvable:$true] %s71_s23 }
  0x2a   :  { %s3300_s24 = scalar_lea.vmem %s49_s22, 64  ;;  %p3305_p2 = scmp.lt.s32.totalorder %s49_s22, %s49_s22 }
  0x2b   :  { %p3301_p1 = scmp.ne.s32.totalorder %s49_s22, %s3300_s24  ;;  %p3306_p3 = scmp.lt.s32.totalorder %s3300_s24, %s3300_s24 }
  0x2d   :  { %p3307_p4 = por %p3306_p3, %p3305_p2 }
  0x2f   :  { %p3308_p5 = pnand %p3307_p4, %p3301_p1 }
  0x31   :  { %3311 = shalt.err (!%p3308_p5)
}
  0x32   :  { %51 = dma.hbm_to_vmem [thread:$0]  %s3536_s2, 64, %s49_s22, [#allocation6]  }
  0x33   :  { %s3320_s27 = scalar_lea.vmem %s72_s23, 256  ;;  %p3325_p7 = scmp.lt.s32.totalorder %s72_s23, %s72_s23 }
  0x34   :  { %p3321_p6 = scmp.ne.s32.totalorder %s72_s23, %s3320_s27  ;;  %p3326_p8 = scmp.lt.s32.totalorder %s3320_s27, %s3320_s27 }
  0x36   :  { %p3327_p9 = por %p3326_p8, %p3325_p7 }
  0x38   :  { %p3328_p10 = pnand %p3327_p9, %p3321_p6 }
  0x3a   :  { %3331 = shalt.err (!%p3328_p10)
}
  0x3b   :  { %s3393_s0 = smov 128   ;;  %s3394_s28 = smov 8  }
  0x3c   :  { %77 = dma.hbm_to_vmem [thread:$0]  %s3539_s5, 256, %s72_s23, [#allocation9], %s3393_s0, %s3393_s0, %s3394_s28  }
  0x3d   :  { %3372 = dma.done.wait [#allocation3], 1024  }
  0x3e   :  { %3373 = vsyncadd [#allocation3], 4294966272 }
  0x3f   :  { %3374 = dma.done.wait [#allocation6], 32832  }
  0x40   :  { %3375 = vsyncadd [#allocation6], 4294934464 }
  0x41   :  { %3376 = dma.done.wait [#allocation9], 4352  }
  0x42   :  { %3377 = vsyncadd [#allocation9], 4294962944  ;;  %v2812_v0 = vld [vmem:[#allocation5 + $0xe4] ss:$16 sps:$4 sm:$0xff]   ;;  %v2816_v2 = vld [vmem:[#allocation5 + $0xe0] ss:$16 sps:$4 sm:$0xff]  }
  0x43   :  { %v2814_v1 = vld [vmem:[#allocation5 + $0x2e4] ss:$16 sps:$4 sm:$0xff]   ;;  %1700 = vmatprep.subr.bf16.mxu0 %v2812_v0  ;;  %v2817_v3 = vld [vmem:[#allocation5 + $0x2e0] ss:$16 sps:$4 sm:$0xff]   ;;  %v95_v50 = vld [vmem:[#allocation2 + $0x8] sm:$0xff]  ;;  %s3395_s8 = smov [#allocation11]  }
  0x44   :  { %1743 = vmatprep.subr.bf16.mxu1 %v2814_v1  ;;  %v2818_v4 = vld [vmem:[#allocation5 + $0xc4] ss:$16 sps:$4 sm:$0xff]   ;;  %1701 = vmatpush1.bf16.msra.mxu0 %v2816_v2  ;;  %v2822_v6 = vld [vmem:[#allocation5 + $0xc0] ss:$16 sps:$4 sm:$0xff]   ;;  %v99_v51 = vld [vmem:[#allocation2 + $0x28] sm:$0xff]  ;;  %s2426_s9 = sshll.u32 %s3395_s8, 4  ;;  %s2427_s9 = int_to_ptr.vmem [resolvable:$true] %s2426_s9 }
  0x45   :  { %1744 = vmatpush1.bf16.msra.mxu1 %v2817_v3  ;;  %v2820_v5 = vld [vmem:[#allocation5 + $0x2c4] ss:$16 sps:$4 sm:$0xff]   ;;  %1702 = vmatprep.subr.bf16.mxu0 %v2818_v4  ;;  %v2823_v7 = vld [vmem:[#allocation5 + $0x2c0] ss:$16 sps:$4 sm:$0xff]   ;;  %v3459_v55 = vcombine.high %v95_v50, %v99_v51  ;;  %p3337_p12 = scmp.lt.s32.totalorder %s2427_s9, %s2427_s9 }
  0x46   :  { %1745 = vmatprep.subr.bf16.mxu1 %v2820_v5  ;;  %v2824_v8 = vld [vmem:[#allocation5 + $0xa4] ss:$16 sps:$4 sm:$0xff]   ;;  %v2828_v10 = vld [vmem:[#allocation5 + $0xa0] ss:$16 sps:$4 sm:$0xff]  }
  0x47   :  { %v2826_v9 = vld [vmem:[#allocation5 + $0x2a4] ss:$16 sps:$4 sm:$0xff]   ;;  %v2829_v11 = vld [vmem:[#allocation5 + $0x2a0] ss:$16 sps:$4 sm:$0xff]   ;;  %1775 = vmatprep.mubr.bf16.mxu1 %v3459_v55 }
  0x48   :  { %1703 = vmatpush1.bf16.msra.mxu0 %v2822_v6  ;;  %v2830_v12 = vld [vmem:[#allocation5 + $0x84] ss:$16 sps:$4 sm:$0xff]   ;;  %v2834_v14 = vld [vmem:[#allocation5 + $0x80] ss:$16 sps:$4 sm:$0xff]  }
  0x49   :  { %1746 = vmatpush1.bf16.msra.mxu1 %v2823_v7  ;;  %1704 = vmatprep.subr.bf16.mxu0 %v2824_v8  ;;  %v2832_v13 = vld [vmem:[#allocation5 + $0x284] ss:$16 sps:$4 sm:$0xff]   ;;  %v2835_v15 = vld [vmem:[#allocation5 + $0x280] ss:$16 sps:$4 sm:$0xff]  }
  0x4a   :  { %1747 = vmatprep.subr.bf16.mxu1 %v2826_v9  ;;  %v2836_v16 = vld [vmem:[#allocation5 + $0x64] ss:$16 sps:$4 sm:$0xff]   ;;  %v2840_v18 = vld [vmem:[#allocation5 + $0x60] ss:$16 sps:$4 sm:$0xff]   ;;  %v3465_v9 = vcombine.low %v95_v50, %v99_v51 }
  0x4b   :  { %v2838_v17 = vld [vmem:[#allocation5 + $0x264] ss:$16 sps:$4 sm:$0xff]   ;;  %v2841_v19 = vld [vmem:[#allocation5 + $0x260] ss:$16 sps:$4 sm:$0xff]  }
  0x4c   :  { %1705 = vmatpush1.bf16.msra.mxu0 %v2828_v10  ;;  %v2842_v20 = vld [vmem:[#allocation5 + $0x44] ss:$16 sps:$4 sm:$0xff]   ;;  %v2846_v22 = vld [vmem:[#allocation5 + $0x40] ss:$16 sps:$4 sm:$0xff]  }
  0x4d   :  { %1748 = vmatpush1.bf16.msra.mxu1 %v2829_v11  ;;  %1706 = vmatprep.subr.bf16.mxu0 %v2830_v12  ;;  %v2844_v21 = vld [vmem:[#allocation5 + $0x244] ss:$16 sps:$4 sm:$0xff]   ;;  %v2847_v23 = vld [vmem:[#allocation5 + $0x240] ss:$16 sps:$4 sm:$0xff]  }
  0x4e   :  { %1749 = vmatprep.subr.bf16.mxu1 %v2832_v13  ;;  %v2848_v24 = vld [vmem:[#allocation5 + $0x24] ss:$16 sps:$4 sm:$0xff]   ;;  %v2852_v26 = vld [vmem:[#allocation5 + $0x20] ss:$16 sps:$4 sm:$0xff]  }
  0x4f   :  { %v2850_v25 = vld [vmem:[#allocation5 + $0x224] ss:$16 sps:$4 sm:$0xff]   ;;  %v2853_v27 = vld [vmem:[#allocation5 + $0x220] ss:$16 sps:$4 sm:$0xff]  }
  0x50   :  { %1707 = vmatpush1.bf16.msra.mxu0 %v2834_v14  ;;  %v2854_v28 = vld [vmem:[#allocation5 + $0x4] ss:$16 sps:$4 sm:$0xff]   ;;  %v2858_v30 = vld [vmem:[#allocation5] ss:$16 sps:$4 sm:$0xff]  }
  0x51   :  { %1750 = vmatpush1.bf16.msra.mxu1 %v2835_v15  ;;  %1708 = vmatprep.subr.bf16.mxu0 %v2836_v16  ;;  %v2856_v29 = vld [vmem:[#allocation5 + $0x204] ss:$16 sps:$4 sm:$0xff]   ;;  %v2859_v31 = vld [vmem:[#allocation5 + $0x200] ss:$16 sps:$4 sm:$0xff]  }
  0x52   :  { %1751 = vmatprep.subr.bf16.mxu1 %v2838_v17  ;;  %v2860_v32 = vld [vmem:[#allocation5 + $0x1e4] ss:$16 sps:$4 sm:$0xff]   ;;  %v2864_v34 = vld [vmem:[#allocation5 + $0x1e0] ss:$16 sps:$4 sm:$0xff]  }
  0x53   :  { %v2862_v33 = vld [vmem:[#allocation5 + $0x3e4] ss:$16 sps:$4 sm:$0xff]   ;;  %v2865_v35 = vld [vmem:[#allocation5 + $0x3e0] ss:$16 sps:$4 sm:$0xff]  }
  0x54   :  { %1709 = vmatpush1.bf16.msra.mxu0 %v2840_v18  ;;  %v2866_v36 = vld [vmem:[#allocation5 + $0x1c4] ss:$16 sps:$4 sm:$0xff]   ;;  %v2870_v38 = vld [vmem:[#allocation5 + $0x1c0] ss:$16 sps:$4 sm:$0xff]  }
  0x55   :  { %1752 = vmatpush1.bf16.msra.mxu1 %v2841_v19  ;;  %1710 = vmatprep.subr.bf16.mxu0 %v2842_v20  ;;  %v2868_v37 = vld [vmem:[#allocation5 + $0x3c4] ss:$16 sps:$4 sm:$0xff]   ;;  %v2871_v39 = vld [vmem:[#allocation5 + $0x3c0] ss:$16 sps:$4 sm:$0xff]  }
  0x56   :  { %1753 = vmatprep.subr.bf16.mxu1 %v2844_v21  ;;  %v2872_v40 = vld [vmem:[#allocation5 + $0x1a4] ss:$16 sps:$4 sm:$0xff]   ;;  %v2876_v42 = vld [vmem:[#allocation5 + $0x1a0] ss:$16 sps:$4 sm:$0xff]  }
  0x57   :  { %v2874_v41 = vld [vmem:[#allocation5 + $0x3a4] ss:$16 sps:$4 sm:$0xff]   ;;  %v2877_v43 = vld [vmem:[#allocation5 + $0x3a0] ss:$16 sps:$4 sm:$0xff]  }
  0x58   :  { %1711 = vmatpush1.bf16.msra.mxu0 %v2846_v22  ;;  %v2878_v44 = vld [vmem:[#allocation5 + $0x184] ss:$16 sps:$4 sm:$0xff]   ;;  %v2882_v46 = vld [vmem:[#allocation5 + $0x180] ss:$16 sps:$4 sm:$0xff]  }
  0x59   :  { %1754 = vmatpush1.bf16.msra.mxu1 %v2847_v23  ;;  %1712 = vmatprep.subr.bf16.mxu0 %v2848_v24  ;;  %v2880_v45 = vld [vmem:[#allocation5 + $0x384] ss:$16 sps:$4 sm:$0xff]   ;;  %v2883_v47 = vld [vmem:[#allocation5 + $0x380] ss:$16 sps:$4 sm:$0xff]  }
  0x5a   :  { %1755 = vmatprep.subr.bf16.mxu1 %v2850_v25  ;;  %v94_v48 = vld [vmem:[#allocation2] sm:$0xff] }
  0x5b   :  { %v98_v49 = vld [vmem:[#allocation2 + $0x20] sm:$0xff] }
  0x5c   :  { %1713 = vmatpush1.bf16.msra.mxu0 %v2852_v26  ;;  %v2884_v52 = vld [vmem:[#allocation5 + $0x164] ss:$16 sps:$4 sm:$0xff]   ;;  %v3457_v53 = vcombine.high %v94_v48, %v98_v49  ;;  %v2888_v56 = vld [vmem:[#allocation5 + $0x160] ss:$16 sps:$4 sm:$0xff]   ;;  %v3463_v8 = vcombine.low %v94_v48, %v98_v49 }
  0x5d   :  { %1756 = vmatpush1.bf16.msra.mxu1 %v2853_v27  ;;  %1714 = vmatprep.subr.bf16.mxu0 %v2854_v28  ;;  %v2886_v54 = vld [vmem:[#allocation5 + $0x364] ss:$16 sps:$4 sm:$0xff]   ;;  %v2889_v57 = vld [vmem:[#allocation5 + $0x360] ss:$16 sps:$4 sm:$0xff]  }
  0x5e   :  { %1757 = vmatprep.subr.bf16.mxu1 %v2856_v29  ;;  %1732 = vmatprep.mubr.bf16.mxu0 %v3457_v53  ;;  %v2890_v58 = vld [vmem:[#allocation5 + $0x144] ss:$16 sps:$4 sm:$0xff]   ;;  %v2894_v60 = vld [vmem:[#allocation5 + $0x140] ss:$16 sps:$4 sm:$0xff]  }
  0x5f   :  { %v2892_v59 = vld [vmem:[#allocation5 + $0x344] ss:$16 sps:$4 sm:$0xff]   ;;  %v2895_v61 = vld [vmem:[#allocation5 + $0x340] ss:$16 sps:$4 sm:$0xff]  }
  0x60   :  { %1715 = vmatpush1.bf16.msra.mxu0 %v2858_v30  ;;  %v2896_v62 = vld [vmem:[#allocation5 + $0x124] ss:$16 sps:$4 sm:$0xff]   ;;  %v2900_v0 = vld [vmem:[#allocation5 + $0x120] ss:$16 sps:$4 sm:$0xff]  }
  0x61   :  { %1758 = vmatpush1.bf16.msra.mxu1 %v2859_v31  ;;  %1716 = vmatprep.subr.bf16.mxu0 %v2860_v32  ;;  %v2898_v63 = vld [vmem:[#allocation5 + $0x324] ss:$16 sps:$4 sm:$0xff]   ;;  %v2901_v1 = vld [vmem:[#allocation5 + $0x320] ss:$16 sps:$4 sm:$0xff]  }
  0x62   :  { %1759 = vmatprep.subr.bf16.mxu1 %v2862_v33  ;;  %v2902_v2 = vld [vmem:[#allocation5 + $0x104] ss:$16 sps:$4 sm:$0xff]   ;;  %v2906_v4 = vld [vmem:[#allocation5 + $0x100] ss:$16 sps:$4 sm:$0xff]  }
  0x63   :  { %v2904_v3 = vld [vmem:[#allocation5 + $0x304] ss:$16 sps:$4 sm:$0xff]   ;;  %v2907_v5 = vld [vmem:[#allocation5 + $0x300] ss:$16 sps:$4 sm:$0xff]  }
  0x64   :  { %1717 = vmatpush2.bf16.msra.mxu0 %v2864_v34  ;;  %v2910_v6 = vld [vmem:[#allocation5 + $0x4e4] ss:$16 sps:$4 sm:$0xff]   ;;  %v2908_v10 = vld [vmem:[#allocation5 + $0x4e0] ss:$16 sps:$4 sm:$0xff]  }
  0x65   :  { %1760 = vmatpush2.bf16.msra.mxu1 %v2865_v35  ;;  %1718 = vmatprep.subr.bf16.mxu0 %v2866_v36  ;;  %v2913_v7 = vld [vmem:[#allocation5 + $0x6e4] ss:$16 sps:$4 sm:$0xff]   ;;  %v2911_v11 = vld [vmem:[#allocation5 + $0x6e0] ss:$16 sps:$4 sm:$0xff]  }
  0x66   :  { %1761 = vmatprep.subr.bf16.mxu1 %v2868_v37  ;;  %v2916_v12 = vld [vmem:[#allocation5 + $0x4c4] ss:$16 sps:$4 sm:$0xff]   ;;  %v2914_v14 = vld [vmem:[#allocation5 + $0x4c0] ss:$16 sps:$4 sm:$0xff]  }
  0x67   :  { %v2919_v13 = vld [vmem:[#allocation5 + $0x6c4] ss:$16 sps:$4 sm:$0xff]   ;;  %v2917_v15 = vld [vmem:[#allocation5 + $0x6c0] ss:$16 sps:$4 sm:$0xff]  }
  0x68   :  { %1719 = vmatpush2.bf16.msra.mxu0 %v2870_v38  ;;  %v2922_v16 = vld [vmem:[#allocation5 + $0x4a4] ss:$16 sps:$4 sm:$0xff]   ;;  %v2920_v18 = vld [vmem:[#allocation5 + $0x4a0] ss:$16 sps:$4 sm:$0xff]   ;;  %v3473_v38 = vld [vmem:[#allocation2 + $0x18] sm:$0xff] }
  0x69   :  { %1762 = vmatpush2.bf16.msra.mxu1 %v2871_v39  ;;  %1720 = vmatprep.subr.bf16.mxu0 %v2872_v40  ;;  %v2925_v17 = vld [vmem:[#allocation5 + $0x6a4] ss:$16 sps:$4 sm:$0xff]   ;;  %v2923_v19 = vld [vmem:[#allocation5 + $0x6a0] ss:$16 sps:$4 sm:$0xff]   ;;  %v3475_v39 = vld [vmem:[#allocation2 + $0x38] sm:$0xff] }
  0x6a   :  { %1763 = vmatprep.subr.bf16.mxu1 %v2874_v41  ;;  %v2928_v20 = vld [vmem:[#allocation5 + $0x484] ss:$16 sps:$4 sm:$0xff]   ;;  %v2926_v22 = vld [vmem:[#allocation5 + $0x480] ss:$16 sps:$4 sm:$0xff]  }
  0x6b   :  { %v2931_v21 = vld [vmem:[#allocation5 + $0x684] ss:$16 sps:$4 sm:$0xff]   ;;  %v2929_v23 = vld [vmem:[#allocation5 + $0x680] ss:$16 sps:$4 sm:$0xff]  }
  0x6c   :  { %1721 = vmatpush2.bf16.msra.mxu0 %v2876_v42  ;;  %v2934_v24 = vld [vmem:[#allocation5 + $0x464] ss:$16 sps:$4 sm:$0xff]   ;;  %v2932_v26 = vld [vmem:[#allocation5 + $0x460] ss:$16 sps:$4 sm:$0xff]  }
  0x6d   :  { %1764 = vmatpush2.bf16.msra.mxu1 %v2877_v43  ;;  %1722 = vmatprep.subr.bf16.mxu0 %v2878_v44  ;;  %v2937_v25 = vld [vmem:[#allocation5 + $0x664] ss:$16 sps:$4 sm:$0xff]   ;;  %v2935_v27 = vld [vmem:[#allocation5 + $0x660] ss:$16 sps:$4 sm:$0xff]   ;;  %v3483_v43 = vcombine.high %v3473_v38, %v3475_v39 }
  0x6e   :  { %1765 = vmatprep.subr.bf16.mxu1 %v2880_v45  ;;  %v2940_v28 = vld [vmem:[#allocation5 + $0x444] ss:$16 sps:$4 sm:$0xff]   ;;  %v2938_v30 = vld [vmem:[#allocation5 + $0x440] ss:$16 sps:$4 sm:$0xff]  }
  0x6f   :  { %v2943_v29 = vld [vmem:[#allocation5 + $0x644] ss:$16 sps:$4 sm:$0xff]   ;;  %v2941_v31 = vld [vmem:[#allocation5 + $0x640] ss:$16 sps:$4 sm:$0xff]  }
  0x70   :  { %1723 = vmatpush2.bf16.msra.mxu0 %v2882_v46  ;;  %v2946_v32 = vld [vmem:[#allocation5 + $0x424] ss:$16 sps:$4 sm:$0xff]   ;;  %v2944_v34 = vld [vmem:[#allocation5 + $0x420] ss:$16 sps:$4 sm:$0xff]  }
  0x71   :  { %1766 = vmatpush2.bf16.msra.mxu1 %v2883_v47  ;;  %1724 = vmatprep.subr.bf16.mxu0 %v2884_v52  ;;  %v2949_v33 = vld [vmem:[#allocation5 + $0x624] ss:$16 sps:$4 sm:$0xff]   ;;  %v2947_v35 = vld [vmem:[#allocation5 + $0x620] ss:$16 sps:$4 sm:$0xff]  }
  0x72   :  { %1767 = vmatprep.subr.bf16.mxu1 %v2886_v54  ;;  %v3469_v36 = vld [vmem:[#allocation2 + $0x10] sm:$0xff] }
  0x73   :  { %v3471_v37 = vld [vmem:[#allocation2 + $0x30] sm:$0xff] }
  0x74   :  { %1725 = vmatpush2.bf16.msra.mxu0 %v2888_v56  ;;  %v2952_v40 = vld [vmem:[#allocation5 + $0x404] ss:$16 sps:$4 sm:$0xff]   ;;  %v3479_v41 = vcombine.high %v3469_v36, %v3471_v37  ;;  %v2950_v44 = vld [vmem:[#allocation5 + $0x400] ss:$16 sps:$4 sm:$0xff]  }
  0x75   :  { %1768 = vmatpush2.bf16.msra.mxu1 %v2889_v57  ;;  %1726 = vmatprep.subr.bf16.mxu0 %v2890_v58  ;;  %v2955_v42 = vld [vmem:[#allocation5 + $0x604] ss:$16 sps:$4 sm:$0xff]   ;;  %v2953_v45 = vld [vmem:[#allocation5 + $0x600] ss:$16 sps:$4 sm:$0xff]  }
  0x76   :  { %1769 = vmatprep.subr.bf16.mxu1 %v2892_v59  ;;  %v2958_v46 = vld [vmem:[#allocation5 + $0x5e4] ss:$16 sps:$4 sm:$0xff]   ;;  %v2956_v48 = vld [vmem:[#allocation5 + $0x5e0] ss:$16 sps:$4 sm:$0xff]  }
  0x77   :  { %v2961_v47 = vld [vmem:[#allocation5 + $0x7e4] ss:$16 sps:$4 sm:$0xff]   ;;  %v2959_v49 = vld [vmem:[#allocation5 + $0x7e0] ss:$16 sps:$4 sm:$0xff]  }
  0x78   :  { %1727 = vmatpush2.bf16.msra.mxu0 %v2894_v60  ;;  %v2964_v50 = vld [vmem:[#allocation5 + $0x5c4] ss:$16 sps:$4 sm:$0xff]   ;;  %v2962_v52 = vld [vmem:[#allocation5 + $0x5c0] ss:$16 sps:$4 sm:$0xff]  }
  0x79   :  { %1770 = vmatpush2.bf16.msra.mxu1 %v2895_v61  ;;  %1728 = vmatprep.subr.bf16.mxu0 %v2896_v62  ;;  %v2967_v51 = vld [vmem:[#allocation5 + $0x7c4] ss:$16 sps:$4 sm:$0xff]   ;;  %v2965_v54 = vld [vmem:[#allocation5 + $0x7c0] ss:$16 sps:$4 sm:$0xff]  }
  0x7a   :  { %1771 = vmatprep.subr.bf16.mxu1 %v2898_v63  ;;  %v2970_v56 = vld [vmem:[#allocation5 + $0x5a4] ss:$16 sps:$4 sm:$0xff]   ;;  %v2968_v58 = vld [vmem:[#allocation5 + $0x5a0] ss:$16 sps:$4 sm:$0xff]  }
  0x7b   :  { %v2973_v57 = vld [vmem:[#allocation5 + $0x7a4] ss:$16 sps:$4 sm:$0xff]   ;;  %v2971_v59 = vld [vmem:[#allocation5 + $0x7a0] ss:$16 sps:$4 sm:$0xff]  }
  0x7c   :  { %1729 = vmatpush2.bf16.msra.mxu0 %v2900_v0  ;;  %v2976_v60 = vld [vmem:[#allocation5 + $0x584] ss:$16 sps:$4 sm:$0xff]   ;;  %v2974_v62 = vld [vmem:[#allocation5 + $0x580] ss:$16 sps:$4 sm:$0xff]  }
  0x7d   :  { %1772 = vmatpush2.bf16.msra.mxu1 %v2901_v1  ;;  %1730 = vmatprep.subr.bf16.mxu0 %v2902_v2  ;;  %v2979_v61 = vld [vmem:[#allocation5 + $0x784] ss:$16 sps:$4 sm:$0xff]   ;;  %v2977_v63 = vld [vmem:[#allocation5 + $0x780] ss:$16 sps:$4 sm:$0xff]  }
  0x7e   :  { %1773 = vmatprep.subr.bf16.mxu1 %v2904_v3  ;;  %v2982_v0 = vld [vmem:[#allocation5 + $0x564] ss:$16 sps:$4 sm:$0xff]   ;;  %v2980_v2 = vld [vmem:[#allocation5 + $0x560] ss:$16 sps:$4 sm:$0xff]  }
  0x7f   :  { %v2985_v1 = vld [vmem:[#allocation5 + $0x764] ss:$16 sps:$4 sm:$0xff]   ;;  %v2983_v3 = vld [vmem:[#allocation5 + $0x760] ss:$16 sps:$4 sm:$0xff]  }
  0x80   :  { %1731 = vmatpush2.bf16.msra.mxu0 %v2906_v4  ;;  %v2988_v4 = vld [vmem:[#allocation5 + $0x544] ss:$16 sps:$4 sm:$0xff]  }
  0x81   :  { %1774 = vmatpush2.bf16.msra.mxu1 %v2907_v5  ;;  %1786 = vmatprep.subr.bf16.mxu0 %v2910_v6  ;;  %v2991_v5 = vld [vmem:[#allocation5 + $0x744] ss:$16 sps:$4 sm:$0xff]   ;;  %v2986_v6 = vld [vmem:[#allocation5 + $0x540] ss:$16 sps:$4 sm:$0xff]  }
  0x82   :  { %1829 = vmatprep.subr.bf16.mxu1 %v2913_v7  ;;  %v2989_v7 = vld [vmem:[#allocation5 + $0x740] ss:$16 sps:$4 sm:$0xff]  }
  0x83   :  { %1733 = vmatmul.mubr.bf16.vlgmr.msra.gmra.mxu0 %v3463_v8 }
  0x84   :  { %1776 = vmatmul.mubr.bf16.vlgmr.msra.gmra.mxu1 %v3465_v9  ;;  %1787 = vmatpush1.bf16.msra.mxu0 %v2908_v10  ;;  %v2994_v10 = vld [vmem:[#allocation5 + $0x524] ss:$16 sps:$4 sm:$0xff]  }
  0x85   :  { %1830 = vmatpush1.bf16.msra.mxu1 %v2911_v11  ;;  %1788 = vmatprep.subr.bf16.mxu0 %v2916_v12  ;;  %v2997_v11 = vld [vmem:[#allocation5 + $0x724] ss:$16 sps:$4 sm:$0xff]   ;;  %v2992_v12 = vld [vmem:[#allocation5 + $0x520] ss:$16 sps:$4 sm:$0xff]  }
  0x86   :  { %1831 = vmatprep.subr.bf16.mxu1 %v2919_v13  ;;  %1818 = vmatprep.mubr.bf16.mxu0 %v3479_v41  ;;  %v2995_v13 = vld [vmem:[#allocation5 + $0x720] ss:$16 sps:$4 sm:$0xff]  }
  0x87   :  { %1861 = vmatprep.mubr.bf16.mxu1 %v3483_v43 }
  0x88   :  { %1789 = vmatpush1.bf16.msra.mxu0 %v2914_v14  ;;  %v3000_v14 = vld [vmem:[#allocation5 + $0x504] ss:$16 sps:$4 sm:$0xff]  }
  0x89   :  { %1832 = vmatpush1.bf16.msra.mxu1 %v2917_v15  ;;  %1790 = vmatprep.subr.bf16.mxu0 %v2922_v16  ;;  %v3003_v15 = vld [vmem:[#allocation5 + $0x704] ss:$16 sps:$4 sm:$0xff]   ;;  %v2998_v16 = vld [vmem:[#allocation5 + $0x500] ss:$16 sps:$4 sm:$0xff]  }
  0x8a   :  { %1833 = vmatprep.subr.bf16.mxu1 %v2925_v17  ;;  %v3001_v17 = vld [vmem:[#allocation5 + $0x700] ss:$16 sps:$4 sm:$0xff]  }
  0x8c   :  { %1791 = vmatpush1.bf16.msra.mxu0 %v2920_v18  ;;  %v3006_v18 = vld [vmem:[#allocation5 + $0xec] ss:$16 sps:$4 sm:$0xff]  }
  0x8d   :  { %1834 = vmatpush1.bf16.msra.mxu1 %v2923_v19  ;;  %1792 = vmatprep.subr.bf16.mxu0 %v2928_v20  ;;  %v3009_v19 = vld [vmem:[#allocation5 + $0x2ec] ss:$16 sps:$4 sm:$0xff]   ;;  %v3489_v20 = vcombine.low %v3469_v36, %v3471_v37 }
  0x8e   :  { %1835 = vmatprep.subr.bf16.mxu1 %v2931_v21  ;;  %v3493_v21 = vcombine.low %v3473_v38, %v3475_v39  ;;  %v3030_v36 = vld [vmem:[#allocation5 + $0x6c] ss:$16 sps:$4 sm:$0xff]   ;;  %v3028_v38 = vld [vmem:[#allocation5 + $0x68] ss:$16 sps:$4 sm:$0xff]  }
  0x8f   :  { %v3033_v37 = vld [vmem:[#allocation5 + $0x26c] ss:$16 sps:$4 sm:$0xff]  }
  0x90   :  { %1793 = vmatpush1.bf16.msra.mxu0 %v2926_v22  ;;  %v3004_v22 = vld [vmem:[#allocation5 + $0xe8] ss:$16 sps:$4 sm:$0xff]   ;;  %v3039_v39 = vld [vmem:[#allocation5 + $0x24c] ss:$16 sps:$4 sm:$0xff]  }
  0x91   :  { %1836 = vmatpush1.bf16.msra.mxu1 %v2929_v23  ;;  %1794 = vmatprep.subr.bf16.mxu0 %v2934_v24  ;;  %v3007_v23 = vld [vmem:[#allocation5 + $0x2e8] ss:$16 sps:$4 sm:$0xff]   ;;  %v3012_v24 = vld [vmem:[#allocation5 + $0xcc] ss:$16 sps:$4 sm:$0xff]  }
  0x92   :  { %1837 = vmatprep.subr.bf16.mxu1 %v2937_v25  ;;  %v3015_v25 = vld [vmem:[#allocation5 + $0x2cc] ss:$16 sps:$4 sm:$0xff]  }
  0x94   :  { %1795 = vmatpush1.bf16.msra.mxu0 %v2932_v26  ;;  %v3010_v26 = vld [vmem:[#allocation5 + $0xc8] ss:$16 sps:$4 sm:$0xff]  }
  0x95   :  { %1838 = vmatpush1.bf16.msra.mxu1 %v2935_v27  ;;  %1796 = vmatprep.subr.bf16.mxu0 %v2940_v28  ;;  %v3013_v27 = vld [vmem:[#allocation5 + $0x2c8] ss:$16 sps:$4 sm:$0xff]   ;;  %v3018_v28 = vld [vmem:[#allocation5 + $0xac] ss:$16 sps:$4 sm:$0xff]  }
  0x96   :  { %1839 = vmatprep.subr.bf16.mxu1 %v2943_v29  ;;  %v3021_v29 = vld [vmem:[#allocation5 + $0x2ac] ss:$16 sps:$4 sm:$0xff]  }
  0x98   :  { %1797 = vmatpush1.bf16.msra.mxu0 %v2938_v30  ;;  %v3016_v30 = vld [vmem:[#allocation5 + $0xa8] ss:$16 sps:$4 sm:$0xff]  }
  0x99   :  { %1840 = vmatpush1.bf16.msra.mxu1 %v2941_v31  ;;  %1798 = vmatprep.subr.bf16.mxu0 %v2946_v32  ;;  %v3019_v31 = vld [vmem:[#allocation5 + $0x2a8] ss:$16 sps:$4 sm:$0xff]   ;;  %v3024_v32 = vld [vmem:[#allocation5 + $0x8c] ss:$16 sps:$4 sm:$0xff]  }
  0x9a   :  { %1841 = vmatprep.subr.bf16.mxu1 %v2949_v33  ;;  %v3027_v33 = vld [vmem:[#allocation5 + $0x28c] ss:$16 sps:$4 sm:$0xff]  }
  0x9c   :  { %1799 = vmatpush1.bf16.msra.mxu0 %v2944_v34  ;;  %v3022_v34 = vld [vmem:[#allocation5 + $0x88] ss:$16 sps:$4 sm:$0xff]  }
  0x9d   :  { %1842 = vmatpush1.bf16.msra.mxu1 %v2947_v35  ;;  %1800 = vmatprep.subr.bf16.mxu0 %v2952_v40  ;;  %v3025_v35 = vld [vmem:[#allocation5 + $0x288] ss:$16 sps:$4 sm:$0xff]  }
  0x9e   :  { %1843 = vmatprep.subr.bf16.mxu1 %v2955_v42  ;;  %v3034_v40 = vld [vmem:[#allocation5 + $0x48] ss:$16 sps:$4 sm:$0xff]  }
  0x9f   :  { %v3037_v42 = vld [vmem:[#allocation5 + $0x248] ss:$16 sps:$4 sm:$0xff]  }
  0xa0   :  { %1801 = vmatpush1.bf16.msra.mxu0 %v2950_v44  ;;  %v3042_v44 = vld [vmem:[#allocation5 + $0x2c] ss:$16 sps:$4 sm:$0xff]  }
  0xa1   :  { %1844 = vmatpush1.bf16.msra.mxu1 %v2953_v45  ;;  %1802 = vmatprep.subr.bf16.mxu0 %v2958_v46  ;;  %v3045_v45 = vld [vmem:[#allocation5 + $0x22c] ss:$16 sps:$4 sm:$0xff]   ;;  %v3040_v46 = vld [vmem:[#allocation5 + $0x28] ss:$16 sps:$4 sm:$0xff]  }
  0xa2   :  { %1845 = vmatprep.subr.bf16.mxu1 %v2961_v47  ;;  %v3043_v47 = vld [vmem:[#allocation5 + $0x228] ss:$16 sps:$4 sm:$0xff]  }
  0xa4   :  { %1803 = vmatpush2.bf16.msra.mxu0 %v2956_v48  ;;  %v3048_v48 = vld [vmem:[#allocation5 + $0xc] ss:$16 sps:$4 sm:$0xff]  }
  0xa5   :  { %1846 = vmatpush2.bf16.msra.mxu1 %v2959_v49  ;;  %1804 = vmatprep.subr.bf16.mxu0 %v2964_v50  ;;  %v3051_v49 = vld [vmem:[#allocation5 + $0x20c] ss:$16 sps:$4 sm:$0xff]   ;;  %v3046_v50 = vld [vmem:[#allocation5 + $0x8] ss:$16 sps:$4 sm:$0xff]  }
  0xa6   :  { %1847 = vmatprep.subr.bf16.mxu1 %v2967_v51  ;;  %v3049_v51 = vld [vmem:[#allocation5 + $0x208] ss:$16 sps:$4 sm:$0xff]  }
  0xa8   :  { %1805 = vmatpush2.bf16.msra.mxu0 %v2962_v52  ;;  %v3054_v52 = vld [vmem:[#allocation5 + $0x1ec] ss:$16 sps:$4 sm:$0xff]  }
  0xa9   :  { %1848 = vmatpush2.bf16.msra.mxu1 %v2965_v54  ;;  %1806 = vmatprep.subr.bf16.mxu0 %v2970_v56  ;;  %v3057_v54 = vld [vmem:[#allocation5 + $0x3ec] ss:$16 sps:$4 sm:$0xff]   ;;  %v3052_v56 = vld [vmem:[#allocation5 + $0x1e8] ss:$16 sps:$4 sm:$0xff]  }
  0xaa   :  { %1849 = vmatprep.subr.bf16.mxu1 %v2973_v57  ;;  %v3055_v57 = vld [vmem:[#allocation5 + $0x3e8] ss:$16 sps:$4 sm:$0xff]  }
  0xac   :  { %1807 = vmatpush2.bf16.msra.mxu0 %v2968_v58  ;;  %v3060_v58 = vld [vmem:[#allocation5 + $0x1cc] ss:$16 sps:$4 sm:$0xff]  }
  0xad   :  { %1850 = vmatpush2.bf16.msra.mxu1 %v2971_v59  ;;  %1808 = vmatprep.subr.bf16.mxu0 %v2976_v60  ;;  %v3063_v59 = vld [vmem:[#allocation5 + $0x3cc] ss:$16 sps:$4 sm:$0xff]   ;;  %v3058_v60 = vld [vmem:[#allocation5 + $0x1c8] ss:$16 sps:$4 sm:$0xff]  }
  0xae   :  { %1851 = vmatprep.subr.bf16.mxu1 %v2979_v61  ;;  %v3061_v61 = vld [vmem:[#allocation5 + $0x3c8] ss:$16 sps:$4 sm:$0xff]  }
  0xb0   :  { %1809 = vmatpush2.bf16.msra.mxu0 %v2974_v62  ;;  %v3066_v62 = vld [vmem:[#allocation5 + $0x1ac] ss:$16 sps:$4 sm:$0xff]  }
  0xb1   :  { %1852 = vmatpush2.bf16.msra.mxu1 %v2977_v63  ;;  %1810 = vmatprep.subr.bf16.mxu0 %v2982_v0  ;;  %v3069_v63 = vld [vmem:[#allocation5 + $0x3ac] ss:$16 sps:$4 sm:$0xff]   ;;  %v3064_v0 = vld [vmem:[#allocation5 + $0x1a8] ss:$16 sps:$4 sm:$0xff]  }
  0xb2   :  { %1853 = vmatprep.subr.bf16.mxu1 %v2985_v1  ;;  %v3067_v1 = vld [vmem:[#allocation5 + $0x3a8] ss:$16 sps:$4 sm:$0xff]  }
  0xb4   :  { %1811 = vmatpush2.bf16.msra.mxu0 %v2980_v2  ;;  %v3072_v2 = vld [vmem:[#allocation5 + $0x18c] ss:$16 sps:$4 sm:$0xff]  }
  0xb5   :  { %1854 = vmatpush2.bf16.msra.mxu1 %v2983_v3  ;;  %1812 = vmatprep.subr.bf16.mxu0 %v2988_v4  ;;  %v3075_v3 = vld [vmem:[#allocation5 + $0x38c] ss:$16 sps:$4 sm:$0xff]   ;;  %v3070_v4 = vld [vmem:[#allocation5 + $0x188] ss:$16 sps:$4 sm:$0xff]  }
  0xb6   :  { %1855 = vmatprep.subr.bf16.mxu1 %v2991_v5  ;;  %v3073_v5 = vld [vmem:[#allocation5 + $0x388] ss:$16 sps:$4 sm:$0xff]  }
  0xb8   :  { %1813 = vmatpush2.bf16.msra.mxu0 %v2986_v6  ;;  %v3078_v6 = vld [vmem:[#allocation5 + $0x16c] ss:$16 sps:$4 sm:$0xff]  }
  0xb9   :  { %1856 = vmatpush2.bf16.msra.mxu1 %v2989_v7  ;;  %1814 = vmatprep.subr.bf16.mxu0 %v2994_v10  ;;  %v3081_v7 = vld [vmem:[#allocation5 + $0x36c] ss:$16 sps:$4 sm:$0xff]   ;;  %v3076_v10 = vld [vmem:[#allocation5 + $0x168] ss:$16 sps:$4 sm:$0xff]  }
  0xba   :  { %1857 = vmatprep.subr.bf16.mxu1 %v2997_v11  ;;  %v3079_v11 = vld [vmem:[#allocation5 + $0x368] ss:$16 sps:$4 sm:$0xff]  }
  0xbc   :  { %1815 = vmatpush2.bf16.msra.mxu0 %v2992_v12  ;;  %v3084_v12 = vld [vmem:[#allocation5 + $0x14c] ss:$16 sps:$4 sm:$0xff]  }
  0xbd   :  { %1858 = vmatpush2.bf16.msra.mxu1 %v2995_v13  ;;  %1816 = vmatprep.subr.bf16.mxu0 %v3000_v14  ;;  %v3087_v13 = vld [vmem:[#allocation5 + $0x34c] ss:$16 sps:$4 sm:$0xff]   ;;  %v3082_v14 = vld [vmem:[#allocation5 + $0x148] ss:$16 sps:$4 sm:$0xff]  }
  0xbe   :  { %1859 = vmatprep.subr.bf16.mxu1 %v3003_v15  ;;  %v3085_v15 = vld [vmem:[#allocation5 + $0x348] ss:$16 sps:$4 sm:$0xff]  }
  0xc0   :  { %1817 = vmatpush2.bf16.msra.mxu0 %v2998_v16  ;;  %v3090_v16 = vld [vmem:[#allocation5 + $0x12c] ss:$16 sps:$4 sm:$0xff]  }
  0xc1   :  { %1860 = vmatpush2.bf16.msra.mxu1 %v3001_v17  ;;  %1872 = vmatprep.subr.bf16.mxu0 %v3006_v18  ;;  %v3093_v17 = vld [vmem:[#allocation5 + $0x32c] ss:$16 sps:$4 sm:$0xff]   ;;  %v3088_v18 = vld [vmem:[#allocation5 + $0x128] ss:$16 sps:$4 sm:$0xff]  }
  0xc2   :  { %1915 = vmatprep.subr.bf16.mxu1 %v3009_v19  ;;  %v3091_v19 = vld [vmem:[#allocation5 + $0x328] ss:$16 sps:$4 sm:$0xff]  }
  0xc3   :  { %1819 = vmatmul.mubr.bf16.vlgmr.msra.gmra.mxu0 %v3489_v20 }
  0xc4   :  { %1862 = vmatmul.mubr.bf16.vlgmr.msra.gmra.mxu1 %v3493_v21  ;;  %1873 = vmatpush1.bf16.msra.mxu0 %v3004_v22  ;;  %v3096_v22 = vld [vmem:[#allocation5 + $0x10c] ss:$16 sps:$4 sm:$0xff]  }
  0xc5   :  { %1916 = vmatpush1.bf16.msra.mxu1 %v3007_v23  ;;  %1874 = vmatprep.subr.bf16.mxu0 %v3012_v24  ;;  %v3099_v23 = vld [vmem:[#allocation5 + $0x30c] ss:$16 sps:$4 sm:$0xff]   ;;  %v3094_v24 = vld [vmem:[#allocation5 + $0x108] ss:$16 sps:$4 sm:$0xff]  }
  0xc6   :  { %1917 = vmatprep.subr.bf16.mxu1 %v3015_v25  ;;  %1904 = vmatprep.mubr.bf16.mxu0 %v3457_v53  ;;  %v3031_v53 = vld [vmem:[#allocation5 + $0x268] ss:$16 sps:$4 sm:$0xff]  }
  0xc7   :  { %1947 = vmatprep.mubr.bf16.mxu1 %v3459_v55  ;;  %v3036_v55 = vld [vmem:[#allocation5 + $0x4c] ss:$16 sps:$4 sm:$0xff]   ;;  %v3097_v25 = vld [vmem:[#allocation5 + $0x308] ss:$16 sps:$4 sm:$0xff]  }
  0xc8   :  { %1875 = vmatpush1.bf16.msra.mxu0 %v3010_v26  ;;  %v3102_v26 = vld [vmem:[#allocation5 + $0x4ec] ss:$16 sps:$4 sm:$0xff]  }
  0xc9   :  { %1918 = vmatpush1.bf16.msra.mxu1 %v3013_v27  ;;  %1876 = vmatprep.subr.bf16.mxu0 %v3018_v28  ;;  %v3105_v27 = vld [vmem:[#allocation5 + $0x6ec] ss:$16 sps:$4 sm:$0xff]   ;;  %v3100_v28 = vld [vmem:[#allocation5 + $0x4e8] ss:$16 sps:$4 sm:$0xff]  }
  0xca   :  { %1919 = vmatprep.subr.bf16.mxu1 %v3021_v29  ;;  %v3103_v29 = vld [vmem:[#allocation5 + $0x6e8] ss:$16 sps:$4 sm:$0xff]  }
  0xcc   :  { %1877 = vmatpush1.bf16.msra.mxu0 %v3016_v30  ;;  %v3108_v30 = vld [vmem:[#allocation5 + $0x4cc] ss:$16 sps:$4 sm:$0xff]  }
  0xcd   :  { %1920 = vmatpush1.bf16.msra.mxu1 %v3019_v31  ;;  %1878 = vmatprep.subr.bf16.mxu0 %v3024_v32  ;;  %v3111_v31 = vld [vmem:[#allocation5 + $0x6cc] ss:$16 sps:$4 sm:$0xff]   ;;  %v3106_v32 = vld [vmem:[#allocation5 + $0x4c8] ss:$16 sps:$4 sm:$0xff]  }
  0xce   :  { %1921 = vmatprep.subr.bf16.mxu1 %v3027_v33  ;;  %v3109_v33 = vld [vmem:[#allocation5 + $0x6c8] ss:$16 sps:$4 sm:$0xff]  }
  0xd0   :  { %1879 = vmatpush1.bf16.msra.mxu0 %v3022_v34  ;;  %v3114_v34 = vld [vmem:[#allocation5 + $0x4ac] ss:$16 sps:$4 sm:$0xff]  }
  0xd1   :  { %1922 = vmatpush1.bf16.msra.mxu1 %v3025_v35  ;;  %1880 = vmatprep.subr.bf16.mxu0 %v3030_v36  ;;  %v3117_v35 = vld [vmem:[#allocation5 + $0x6ac] ss:$16 sps:$4 sm:$0xff]   ;;  %v3112_v36 = vld [vmem:[#allocation5 + $0x4a8] ss:$16 sps:$4 sm:$0xff]  }
  0xd2   :  { %1923 = vmatprep.subr.bf16.mxu1 %v3033_v37  ;;  %v3115_v37 = vld [vmem:[#allocation5 + $0x6a8] ss:$16 sps:$4 sm:$0xff]  }
  0xd4   :  { %1881 = vmatpush1.bf16.msra.mxu0 %v3028_v38  ;;  %v3120_v38 = vld [vmem:[#allocation5 + $0x48c] ss:$16 sps:$4 sm:$0xff]  }
  0xd5   :  { %1924 = vmatpush1.bf16.msra.mxu1 %v3031_v53  ;;  %1882 = vmatprep.subr.bf16.mxu0 %v3036_v55  ;;  %v3121_v53 = vld [vmem:[#allocation5 + $0x688] ss:$16 sps:$4 sm:$0xff]   ;;  %v3126_v55 = vld [vmem:[#allocation5 + $0x46c] ss:$16 sps:$4 sm:$0xff]  }
  0xd6   :  { %1925 = vmatprep.subr.bf16.mxu1 %v3039_v39  ;;  %v3129_v39 = vld [vmem:[#allocation5 + $0x66c] ss:$16 sps:$4 sm:$0xff]  }
  0xd8   :  { %1883 = vmatpush1.bf16.msra.mxu0 %v3034_v40  ;;  %v3132_v40 = vld [vmem:[#allocation5 + $0x44c] ss:$16 sps:$4 sm:$0xff]  }
  0xd9   :  { %1926 = vmatpush1.bf16.msra.mxu1 %v3037_v42  ;;  %1884 = vmatprep.subr.bf16.mxu0 %v3042_v44  ;;  %v3135_v42 = vld [vmem:[#allocation5 + $0x64c] ss:$16 sps:$4 sm:$0xff]   ;;  %v3130_v44 = vld [vmem:[#allocation5 + $0x448] ss:$16 sps:$4 sm:$0xff]  }
  0xda   :  { %1927 = vmatprep.subr.bf16.mxu1 %v3045_v45  ;;  %v3133_v45 = vld [vmem:[#allocation5 + $0x648] ss:$16 sps:$4 sm:$0xff]  }
  0xdc   :  { %1885 = vmatpush1.bf16.msra.mxu0 %v3040_v46  ;;  %v3138_v46 = vld [vmem:[#allocation5 + $0x42c] ss:$16 sps:$4 sm:$0xff]  }
  0xdd   :  { %1928 = vmatpush1.bf16.msra.mxu1 %v3043_v47  ;;  %1886 = vmatprep.subr.bf16.mxu0 %v3048_v48  ;;  %v3141_v47 = vld [vmem:[#allocation5 + $0x62c] ss:$16 sps:$4 sm:$0xff]   ;;  %v3136_v48 = vld [vmem:[#allocation5 + $0x428] ss:$16 sps:$4 sm:$0xff]  }
  0xde   :  { %1929 = vmatprep.subr.bf16.mxu1 %v3051_v49  ;;  %v3139_v49 = vld [vmem:[#allocation5 + $0x628] ss:$16 sps:$4 sm:$0xff]  }
  0xe0   :  { %1887 = vmatpush1.bf16.msra.mxu0 %v3046_v50  ;;  %v3144_v50 = vld [vmem:[#allocation5 + $0x40c] ss:$16 sps:$4 sm:$0xff]  }
  0xe1   :  { %1930 = vmatpush1.bf16.msra.mxu1 %v3049_v51  ;;  %1888 = vmatprep.subr.bf16.mxu0 %v3054_v52  ;;  %v3147_v51 = vld [vmem:[#allocation5 + $0x60c] ss:$16 sps:$4 sm:$0xff]   ;;  %v3142_v52 = vld [vmem:[#allocation5 + $0x408] ss:$16 sps:$4 sm:$0xff]  }
  0xe2   :  { %1931 = vmatprep.subr.bf16.mxu1 %v3057_v54  ;;  %v3145_v54 = vld [vmem:[#allocation5 + $0x608] ss:$16 sps:$4 sm:$0xff]  }
  0xe4   :  { %1889 = vmatpush2.bf16.msra.mxu0 %v3052_v56  ;;  %v3150_v56 = vld [vmem:[#allocation5 + $0x5ec] ss:$16 sps:$4 sm:$0xff]  }
  0xe5   :  { %1932 = vmatpush2.bf16.msra.mxu1 %v3055_v57  ;;  %1890 = vmatprep.subr.bf16.mxu0 %v3060_v58  ;;  %v3153_v57 = vld [vmem:[#allocation5 + $0x7ec] ss:$16 sps:$4 sm:$0xff]   ;;  %v3148_v58 = vld [vmem:[#allocation5 + $0x5e8] ss:$16 sps:$4 sm:$0xff]  }
  0xe6   :  { %1933 = vmatprep.subr.bf16.mxu1 %v3063_v59  ;;  %v3151_v59 = vld [vmem:[#allocation5 + $0x7e8] ss:$16 sps:$4 sm:$0xff]  }
  0xe8   :  { %1891 = vmatpush2.bf16.msra.mxu0 %v3058_v60  ;;  %v3156_v60 = vld [vmem:[#allocation5 + $0x5cc] ss:$16 sps:$4 sm:$0xff]  }
  0xe9   :  { %1934 = vmatpush2.bf16.msra.mxu1 %v3061_v61  ;;  %1892 = vmatprep.subr.bf16.mxu0 %v3066_v62  ;;  %v3159_v61 = vld [vmem:[#allocation5 + $0x7cc] ss:$16 sps:$4 sm:$0xff]   ;;  %v3154_v62 = vld [vmem:[#allocation5 + $0x5c8] ss:$16 sps:$4 sm:$0xff]  }
  0xea   :  { %1935 = vmatprep.subr.bf16.mxu1 %v3069_v63  ;;  %v3157_v63 = vld [vmem:[#allocation5 + $0x7c8] ss:$16 sps:$4 sm:$0xff]  }
  0xec   :  { %1893 = vmatpush2.bf16.msra.mxu0 %v3064_v0  ;;  %v3162_v0 = vld [vmem:[#allocation5 + $0x5ac] ss:$16 sps:$4 sm:$0xff]  }
  0xed   :  { %1936 = vmatpush2.bf16.msra.mxu1 %v3067_v1  ;;  %1894 = vmatprep.subr.bf16.mxu0 %v3072_v2  ;;  %v3165_v1 = vld [vmem:[#allocation5 + $0x7ac] ss:$16 sps:$4 sm:$0xff]   ;;  %v3160_v2 = vld [vmem:[#allocation5 + $0x5a8] ss:$16 sps:$4 sm:$0xff]  }
  0xee   :  { %1937 = vmatprep.subr.bf16.mxu1 %v3075_v3  ;;  %v3163_v3 = vld [vmem:[#allocation5 + $0x7a8] ss:$16 sps:$4 sm:$0xff]  }
  0xf0   :  { %1895 = vmatpush2.bf16.msra.mxu0 %v3070_v4  ;;  %v3168_v4 = vld [vmem:[#allocation5 + $0x58c] ss:$16 sps:$4 sm:$0xff]  }
  0xf1   :  { %1938 = vmatpush2.bf16.msra.mxu1 %v3073_v5  ;;  %1896 = vmatprep.subr.bf16.mxu0 %v3078_v6  ;;  %v3171_v5 = vld [vmem:[#allocation5 + $0x78c] ss:$16 sps:$4 sm:$0xff]   ;;  %v3166_v6 = vld [vmem:[#allocation5 + $0x588] ss:$16 sps:$4 sm:$0xff]  }
  0xf2   :  { %1939 = vmatprep.subr.bf16.mxu1 %v3081_v7  ;;  %v3169_v7 = vld [vmem:[#allocation5 + $0x788] ss:$16 sps:$4 sm:$0xff]  }
  0xf4   :  { %1897 = vmatpush2.bf16.msra.mxu0 %v3076_v10  ;;  %v3174_v10 = vld [vmem:[#allocation5 + $0x56c] ss:$16 sps:$4 sm:$0xff]  }
  0xf5   :  { %1940 = vmatpush2.bf16.msra.mxu1 %v3079_v11  ;;  %1898 = vmatprep.subr.bf16.mxu0 %v3084_v12  ;;  %v3177_v11 = vld [vmem:[#allocation5 + $0x76c] ss:$16 sps:$4 sm:$0xff]   ;;  %v3172_v12 = vld [vmem:[#allocation5 + $0x568] ss:$16 sps:$4 sm:$0xff]  }
  0xf6   :  { %1941 = vmatprep.subr.bf16.mxu1 %v3087_v13  ;;  %v3175_v13 = vld [vmem:[#allocation5 + $0x768] ss:$16 sps:$4 sm:$0xff]  }
  0xf8   :  { %1899 = vmatpush2.bf16.msra.mxu0 %v3082_v14  ;;  %v3180_v14 = vld [vmem:[#allocation5 + $0x54c] ss:$16 sps:$4 sm:$0xff]  }
  0xf9   :  { %1942 = vmatpush2.bf16.msra.mxu1 %v3085_v15  ;;  %1900 = vmatprep.subr.bf16.mxu0 %v3090_v16  ;;  %v3183_v15 = vld [vmem:[#allocation5 + $0x74c] ss:$16 sps:$4 sm:$0xff]   ;;  %v3178_v16 = vld [vmem:[#allocation5 + $0x548] ss:$16 sps:$4 sm:$0xff]  }
  0xfa   :  { %1943 = vmatprep.subr.bf16.mxu1 %v3093_v17  ;;  %v3181_v17 = vld [vmem:[#allocation5 + $0x748] ss:$16 sps:$4 sm:$0xff]  }
  0xfc   :  { %1901 = vmatpush2.bf16.msra.mxu0 %v3088_v18  ;;  %v3186_v18 = vld [vmem:[#allocation5 + $0x52c] ss:$16 sps:$4 sm:$0xff]  }
  0xfd   :  { %1944 = vmatpush2.bf16.msra.mxu1 %v3091_v19  ;;  %1902 = vmatprep.subr.bf16.mxu0 %v3096_v22  ;;  %v3189_v19 = vld [vmem:[#allocation5 + $0x72c] ss:$16 sps:$4 sm:$0xff]   ;;  %v3184_v22 = vld [vmem:[#allocation5 + $0x528] ss:$16 sps:$4 sm:$0xff]  }
  0xfe   :  { %1945 = vmatprep.subr.bf16.mxu1 %v3099_v23  ;;  %v3187_v23 = vld [vmem:[#allocation5 + $0x728] ss:$16 sps:$4 sm:$0xff]  }
 0x100   :  { %1903 = vmatpush2.bf16.msra.mxu0 %v3094_v24  ;;  %v3192_v24 = vld [vmem:[#allocation5 + $0x50c] ss:$16 sps:$4 sm:$0xff]  }
 0x101   :  { %1946 = vmatpush2.bf16.msra.mxu1 %v3097_v25  ;;  %1958 = vmatprep.subr.bf16.mxu0 %v3102_v26  ;;  %v3195_v25 = vld [vmem:[#allocation5 + $0x70c] ss:$16 sps:$4 sm:$0xff]   ;;  %v3190_v26 = vld [vmem:[#allocation5 + $0x508] ss:$16 sps:$4 sm:$0xff]  }
 0x102   :  { %2001 = vmatprep.subr.bf16.mxu1 %v3105_v27  ;;  %v3193_v27 = vld [vmem:[#allocation5 + $0x708] ss:$16 sps:$4 sm:$0xff]  }
 0x103   :  { %1905 = vmatmul.mubr.bf16.vlgmr.msra.gmra.mxu0 %v3463_v8  ;;  %v3123_v8 = vld [vmem:[#allocation5 + $0x68c] ss:$16 sps:$4 sm:$0xff]  }
 0x104   :  { %1948 = vmatmul.mubr.bf16.vlgmr.msra.gmra.mxu1 %v3465_v9  ;;  %1959 = vmatpush1.bf16.msra.mxu0 %v3100_v28  ;;  %v3118_v9 = vld [vmem:[#allocation5 + $0x488] ss:$16 sps:$4 sm:$0xff]   ;;  %v3196_v28 = vld [vmem:[#allocation8 + $0x78] sm:$0xff]  }
 0x105   :  { %2002 = vmatpush1.bf16.msra.mxu1 %v3103_v29  ;;  %1960 = vmatprep.subr.bf16.mxu0 %v3108_v30  ;;  %v3197_v29 = vld [vmem:[#allocation8 + $0x38] sm:$0xff]   ;;  %v3198_v30 = vld [vmem:[#allocation8 + $0x70] sm:$0xff]  }
 0x106   :  { %2003 = vmatprep.subr.bf16.mxu1 %v3111_v31  ;;  %1990 = vmatprep.mubr.bf16.mxu0 %v3479_v41  ;;  %v3124_v41 = vld [vmem:[#allocation5 + $0x468] ss:$16 sps:$4 sm:$0xff]  }
 0x107   :  { %2033 = vmatprep.mubr.bf16.mxu1 %v3483_v43  ;;  %v3127_v43 = vld [vmem:[#allocation5 + $0x668] ss:$16 sps:$4 sm:$0xff]  }
 0x108   :  { %1961 = vmatpush1.bf16.msra.mxu0 %v3106_v32  ;;  %v3199_v31 = vld [vmem:[#allocation8 + $0x30] sm:$0xff]   ;;  %v3200_v32 = vld [vmem:[#allocation8 + $0x68] sm:$0xff]  }
 0x109   :  { %2004 = vmatpush1.bf16.msra.mxu1 %v3109_v33  ;;  %1962 = vmatprep.subr.bf16.mxu0 %v3114_v34  ;;  %v3201_v33 = vld [vmem:[#allocation8 + $0x28] sm:$0xff]   ;;  %v3202_v34 = vld [vmem:[#allocation8 + $0x60] sm:$0xff]  }
 0x10a   :  { %2005 = vmatprep.subr.bf16.mxu1 %v3117_v35  ;;  %v3203_v35 = vld [vmem:[#allocation8 + $0x20] sm:$0xff]  }
 0x10c   :  { %1963 = vmatpush1.bf16.msra.mxu0 %v3112_v36  ;;  %v3212_v36 = vld [vmem:[#allocation8 + $0xf8] sm:$0xff]  }
 0x10d   :  { %2006 = vmatpush1.bf16.msra.mxu1 %v3115_v37  ;;  %1964 = vmatprep.subr.bf16.mxu0 %v3120_v38  ;;  %v3213_v37 = vld [vmem:[#allocation8 + $0xb8] sm:$0xff]   ;;  %v3214_v38 = vld [vmem:[#allocation8 + $0xf0] sm:$0xff]  }
 0x10e   :  { %2007 = vmatprep.subr.bf16.mxu1 %v3123_v8  ;;  %v3204_v8 = vld [vmem:[#allocation8 + $0x58] sm:$0xff]  }
 0x110   :  { %1965 = vmatpush1.bf16.msra.mxu0 %v3118_v9  ;;  %v3216_v9 = vld [vmem:[#allocation8 + $0xe8] sm:$0xff]  }
 0x111   :  { %2008 = vmatpush1.bf16.msra.mxu1 %v3121_v53  ;;  %1966 = vmatprep.subr.bf16.mxu0 %v3126_v55  ;;  %v3206_v53 = vld [vmem:[#allocation8 + $0x50] sm:$0xff]   ;;  %v3217_v55 = vld [vmem:[#allocation8 + $0xa8] sm:$0xff]  }
 0x112   :  { %2009 = vmatprep.subr.bf16.mxu1 %v3129_v39  ;;  %v3207_v39 = vld [vmem:[#allocation8 + $0x10] sm:$0xff]  }
 0x114   :  { %1967 = vmatpush1.bf16.msra.mxu0 %v3124_v41  ;;  %v3218_v41 = vld [vmem:[#allocation8 + $0xe0] sm:$0xff]  }
 0x115   :  { %2010 = vmatpush1.bf16.msra.mxu1 %v3127_v43  ;;  %1968 = vmatprep.subr.bf16.mxu0 %v3132_v40  ;;  %v3208_v43 = vld [vmem:[#allocation8 + $0x48] sm:$0xff]   ;;  %v3219_v40 = vld [vmem:[#allocation8 + $0xa0] sm:$0xff]  }
 0x116   :  { %2011 = vmatprep.subr.bf16.mxu1 %v3135_v42  ;;  %v3209_v42 = vld [vmem:[#allocation8 + $0x8] sm:$0xff]  }
 0x118   :  { %1969 = vmatpush1.bf16.msra.mxu0 %v3130_v44  ;;  %v3210_v44 = vld [vmem:[#allocation8 + $0x40] sm:$0xff]  }
 0x119   :  { %2012 = vmatpush1.bf16.msra.mxu1 %v3133_v45  ;;  %1970 = vmatprep.subr.bf16.mxu0 %v3138_v46  ;;  %v3211_v45 = vld [vmem:[#allocation8] sm:$0xff]   ;;  %v360_v46 = vlaneseq }
 0x11a   :  { %2013 = vmatprep.subr.bf16.mxu1 %v3141_v47 }
 0x11b   :  { %v3505_v47 = vshrl.u32 %v360_v46, 7 }
 0x11c   :  { %1971 = vmatpush1.bf16.msra.mxu0 %v3136_v48 }
 0x11d   :  { %2014 = vmatpush1.bf16.msra.mxu1 %v3139_v49  ;;  %1972 = vmatprep.subr.bf16.mxu0 %v3144_v50  ;;  %v366_v50 = vsub.s32 1, %v3505_v47 }
 0x11e   :  { %2015 = vmatprep.subr.bf16.mxu1 %v3147_v51  ;;  %v3508_v51 = vld [vmem:[#allocation7] sm:$0xf] }
 0x120   :  { %1973 = vmatpush1.bf16.msra.mxu0 %v3142_v52  ;;  %v362_v52 = vsub.s32 0, %v3505_v47 }
 0x121   :  { %2016 = vmatpush1.bf16.msra.mxu1 %v3145_v54  ;;  %1974 = vmatprep.subr.bf16.mxu0 %v3150_v56 }
 0x122   :  { %2017 = vmatprep.subr.bf16.mxu1 %v3153_v57  ;;  %v367_v57 = vrot.slane %v3508_v51, %v366_v50 }
 0x124   :  { %1975 = vmatpush2.bf16.msra.mxu0 %v3148_v58  ;;  %v363_v58 = vrot.slane %v3508_v51, %v362_v52 }
 0x125   :  { %2018 = vmatpush2.bf16.msra.mxu1 %v3151_v59  ;;  %1976 = vmatprep.subr.bf16.mxu0 %v3156_v60 }
 0x126   :  { %2019 = vmatprep.subr.bf16.mxu1 %v3159_v61 }
 0x128   :  { %1977 = vmatpush2.bf16.msra.mxu0 %v3154_v62 }
 0x129   :  { %2020 = vmatpush2.bf16.msra.mxu1 %v3157_v63  ;;  %1978 = vmatprep.subr.bf16.mxu0 %v3162_v0 }
 0x12a   :  { %2021 = vmatprep.subr.bf16.mxu1 %v3165_v1  ;;  %v3220_v1 = vld [vmem:[#allocation8 + $0xd8] sm:$0xff]  }
 0x12c   :  { %1979 = vmatpush2.bf16.msra.mxu0 %v3160_v2 }
 0x12d   :  { %2022 = vmatpush2.bf16.msra.mxu1 %v3163_v3  ;;  %1980 = vmatprep.subr.bf16.mxu0 %v3168_v4  ;;  %v3221_v3 = vld [vmem:[#allocation8 + $0x98] sm:$0xff]  }
 0x12e   :  { %2023 = vmatprep.subr.bf16.mxu1 %v3171_v5 }
 0x130   :  { %1981 = vmatpush2.bf16.msra.mxu0 %v3166_v6 }
 0x131   :  { %2024 = vmatpush2.bf16.msra.mxu1 %v3169_v7  ;;  %1982 = vmatprep.subr.bf16.mxu0 %v3174_v10 }
 0x132   :  { %2025 = vmatprep.subr.bf16.mxu1 %v3177_v11 }
 0x134   :  { %1983 = vmatpush2.bf16.msra.mxu0 %v3172_v12 }
 0x135   :  { %2026 = vmatpush2.bf16.msra.mxu1 %v3175_v13  ;;  %1984 = vmatprep.subr.bf16.mxu0 %v3180_v14  ;;  %v3222_v13 = vld [vmem:[#allocation8 + $0xd0] sm:$0xff]  }
 0x136   :  { %2027 = vmatprep.subr.bf16.mxu1 %v3183_v15 }
 0x138   :  { %1985 = vmatpush2.bf16.msra.mxu0 %v3178_v16  ;;  %v3223_v16 = vld [vmem:[#allocation8 + $0x90] sm:$0xff]  }
 0x139   :  { %2028 = vmatpush2.bf16.msra.mxu1 %v3181_v17  ;;  %1986 = vmatprep.subr.bf16.mxu0 %v3186_v18 }
 0x13a   :  { %2029 = vmatprep.subr.bf16.mxu1 %v3189_v19 }
 0x13c   :  { %1987 = vmatpush2.bf16.msra.mxu0 %v3184_v22 }
 0x13d   :  { %2030 = vmatpush2.bf16.msra.mxu1 %v3187_v23  ;;  %1988 = vmatprep.subr.bf16.mxu0 %v3192_v24 }
 0x13e   :  { %2031 = vmatprep.subr.bf16.mxu1 %v3195_v25  ;;  %v3224_v25 = vld [vmem:[#allocation8 + $0xc8] sm:$0xff]  }
 0x140   :  { %1989 = vmatpush2.bf16.msra.mxu0 %v3190_v26 }
 0x141   :  { %2032 = vmatpush2.bf16.msra.mxu1 %v3193_v27  ;;  %2753 = vmatprep.subr.bf16.mxu0 %v3196_v28 }
 0x142   :  { %2775 = vmatprep.subr.bf16.mxu1 %v3212_v36 }
 0x143   :  { %1991 = vmatmul.mubr.bf16.vlgmr.msra.gmra.mxu0 %v3489_v20  ;;  %v3215_v20 = vld [vmem:[#allocation8 + $0xb0] sm:$0xff]   ;;  %v1734_v48 = vpop.f32.mrf.mxu0 }
 0x144   :  { %2034 = vmatmul.mubr.bf16.vlgmr.msra.gmra.mxu1 %v3493_v21  ;;  %2754 = vmatpush3.bf16.msra.mxu0 %v3197_v29  ;;  %v3205_v21 = vld [vmem:[#allocation8 + $0x18] sm:$0xff]   ;;  %v1777_v49 = vpop.f32.mrf.mxu1  ;;  %v1735_v62 = vadd.f32 %v1734_v48, %v363_v58  ;;  %v3225_v29 = vld [vmem:[#allocation8 + $0x88] sm:$0xff]  }
 0x145   :  { %2755 = vmatprep.subr.bf16.mxu0 %v3198_v30  ;;  %2776 = vmatpush3.bf16.msra.mxu1 %v3213_v37  ;;  %v1736_v54 = vpop.f32.mrf.mxu0  ;;  %v3227_v37 = vld [vmem:[#allocation8 + $0x80] sm:$0xff]  }
 0x146   :  { %2777 = vmatprep.subr.bf16.mxu1 %v3214_v38  ;;  %v1779_v56 = vpop.f32.mrf.mxu1  ;;  %v1737_v61 = vadd.f32 %v1736_v54, %v367_v57  ;;  %v1778_v10 = vadd.f32 %v1777_v49, %v1735_v62 }
 0x147   :  { %v1738_v59 = vpop.f32.mrf.mxu0 }
 0x148   :  { %2756 = vmatpush3.bf16.msra.mxu0 %v3199_v31  ;;  %v1781_v60 = vpop.f32.mrf.mxu1  ;;  %v1739_v2 = vadd.f32 %v1738_v59, %v363_v58  ;;  %v1780_v6 = vadd.f32 %v1779_v56, %v1737_v61 }
 0x149   :  { %2757 = vmatprep.subr.bf16.mxu0 %v3200_v32  ;;  %2778 = vmatpush3.bf16.msra.mxu1 %v3215_v20  ;;  %v1740_v63 = vpop.f32.mrf.mxu0 }
 0x14a   :  { %2779 = vmatprep.subr.bf16.mxu1 %v3216_v9  ;;  %v1783_v0 = vpop.f32.mrf.mxu1  ;;  %v1741_v7 = vadd.f32 %v1740_v63, %v367_v57  ;;  %v1782_v14 = vadd.f32 %v1781_v60, %v1739_v2 }
 0x14c   :  { %2758 = vmatpush3.bf16.msra.mxu0 %v3201_v33  ;;  %v1784_v22 = vadd.f32 %v1783_v0, %v1741_v7 }
 0x14d   :  { %2759 = vmatprep.subr.bf16.mxu0 %v3202_v34  ;;  %2780 = vmatpush3.bf16.msra.mxu1 %v3217_v55  ;;  %v3226_v34 = vld [vmem:[#allocation8 + $0xc0] sm:$0xff]   ;;  %v370_v55 = vsub.s32 2, %v3505_v47 }
 0x14e   :  { %2781 = vmatprep.subr.bf16.mxu1 %v3218_v41 }
 0x150   :  { %2760 = vmatpush3.bf16.msra.mxu0 %v3203_v35 }
 0x151   :  { %2761 = vmatprep.subr.bf16.mxu0 %v3204_v8  ;;  %2782 = vmatpush3.bf16.msra.mxu1 %v3219_v40  ;;  %v371_v40 = vrot.slane %v3508_v51, %v370_v55 }
 0x152   :  { %2783 = vmatprep.subr.bf16.mxu1 %v3220_v1 }
 0x154   :  { %2762 = vmatpush3.bf16.msra.mxu0 %v3205_v21 }
 0x155   :  { %2763 = vmatprep.subr.bf16.mxu0 %v3206_v53  ;;  %2784 = vmatpush3.bf16.msra.mxu1 %v3221_v3  ;;  %v374_v53 = vsub.s32 3, %v3505_v47 }
 0x156   :  { %2785 = vmatprep.subr.bf16.mxu1 %v3222_v13 }
 0x158   :  { %2764 = vmatpush3.bf16.msra.mxu0 %v3207_v39 }
 0x159   :  { %2765 = vmatprep.subr.bf16.mxu0 %v3208_v43  ;;  %2786 = vmatpush3.bf16.msra.mxu1 %v3223_v16  ;;  %v375_v43 = vrot.slane %v3508_v51, %v374_v53 }
 0x15a   :  { %2787 = vmatprep.subr.bf16.mxu1 %v3224_v25 }
 0x15c   :  { %2766 = vmatpush3.bf16.msra.mxu0 %v3209_v42 }
 0x15d   :  { %2767 = vmatprep.subr.bf16.mxu0 %v3210_v44  ;;  %2788 = vmatpush3.bf16.msra.mxu1 %v3225_v29 }
 0x15e   :  { %2789 = vmatprep.subr.bf16.mxu1 %v3226_v34 }
 0x160   :  { %2768 = vmatpush3.bf16.msra.mxu0 %v3211_v45 }
 0x161   :  { %2790 = vmatpush3.bf16.msra.mxu1 %v3227_v37 }
 0x183   :  { %v1820_v4 = vpop.f32.mrf.mxu0 }
 0x184   :  { %v1863_v5 = vpop.f32.mrf.mxu1  ;;  %v1821_v17 = vadd.f32 %v1820_v4, %v1778_v10 }
 0x185   :  { %v1822_v11 = vpop.f32.mrf.mxu0 }
 0x186   :  { %v1865_v12 = vpop.f32.mrf.mxu1  ;;  %v1823_v15 = vadd.f32 %v1822_v11, %v1780_v6  ;;  %v1864_v30 = vadd.f32 %v1863_v5, %v1821_v17 }
 0x187   :  { %v1824_v18 = vpop.f32.mrf.mxu0 }
 0x188   :  { %v1867_v19 = vpop.f32.mrf.mxu1  ;;  %v1825_v23 = vadd.f32 %v1824_v18, %v1782_v14  ;;  %v1866_v26 = vadd.f32 %v1865_v12, %v1823_v15  ;;  %v2044_v38 = vmax.f32 %v1864_v30, 0.0 }
 0x189   :  { %v1826_v24 = vpop.f32.mrf.mxu0 }
 0x18a   :  { %v1868_v27 = vadd.f32 %v1867_v19, %v1825_v23  ;;  %v1827_v28 = vadd.f32 %v1826_v24, %v1784_v22  ;;  %v1869_v31 = vpop.f32.mrf.mxu1  ;;  %v2045_v35 = vmax.f32 %v1866_v26, 0.0  ;;  %v2720_v23 = vld [vmem:[%s3538_s4] ss:$0 sm:$0xff]  ;;  %s3332_s4 = scalar_lea.vmem %s2427_s9, 256 }
 0x18b   :  { %p3333_p11 = scmp.ne.s32.totalorder %s2427_s9, %s3332_s4  ;;  %p3338_p13 = scmp.lt.s32.totalorder %s3332_s4, %s3332_s4 }
 0x18c   :  { %v1870_v32 = vadd.f32 %v1869_v31, %v1827_v28  ;;  %v2048_v33 = vmax.f32 %v1868_v27, 0.0 }
 0x18d   :  { %p3339_p0 = por %p3338_p13, %p3337_p12 }
 0x18e   :  { %v2049_v36 = vmax.f32 %v1870_v32, 0.0  ;;  %v2052_v20 = vpack.c.bf16 %v2048_v33, %v2044_v38 }
 0x18f   :  { %p3340_p1 = pnand %p3339_p0, %p3333_p11 }
 0x190   :  { %v2053_v8 = vpack.c.bf16 %v2049_v36, %v2045_v35 }
 0x192   :  { %2351 = vmatprep.mubr.bf16.mxu0 %v2053_v8 }
 0x193   :  { %2352 = vmatmul.mubr.bf16.vlgmr.msra.gmra.mxu0 %v2052_v20 }
 0x1c3   :  { %v1906_v21 = vpop.f32.mrf.mxu0 }
 0x1c4   :  { %v1949_v9 = vpop.f32.mrf.mxu1  ;;  %v1907_v46 = vadd.f32 %v1906_v21, %v371_v40 }
 0x1c5   :  { %v1908_v39 = vpop.f32.mrf.mxu0 }
 0x1c6   :  { %v1951_v41 = vpop.f32.mrf.mxu1  ;;  %v1909_v45 = vadd.f32 %v1908_v39, %v375_v43  ;;  %v1950_v58 = vadd.f32 %v1949_v9, %v1907_v46 }
 0x1c7   :  { %v1910_v42 = vpop.f32.mrf.mxu0 }
 0x1c8   :  { %v1953_v44 = vpop.f32.mrf.mxu1  ;;  %v1911_v50 = vadd.f32 %v1910_v42, %v371_v40  ;;  %v1952_v56 = vadd.f32 %v1951_v41, %v1909_v45 }
 0x1c9   :  { %v1912_v48 = vpop.f32.mrf.mxu0 }
 0x1ca   :  { %v1955_v49 = vpop.f32.mrf.mxu1  ;;  %v1913_v57 = vadd.f32 %v1912_v48, %v375_v43  ;;  %v1954_v60 = vadd.f32 %v1953_v44, %v1911_v50 }
 0x1cc   :  { %v1956_v51 = vadd.f32 %v1955_v49, %v1913_v57 }
 0x203   :  { %v1992_v52 = vpop.f32.mrf.mxu0 }
 0x204   :  { %v2035_v54 = vpop.f32.mrf.mxu1  ;;  %v1993_v62 = vadd.f32 %v1992_v52, %v1950_v58 }
 0x205   :  { %v1994_v59 = vpop.f32.mrf.mxu0 }
 0x206   :  { %v2037_v47 = vpop.f32.mrf.mxu1  ;;  %v1995_v61 = vadd.f32 %v1994_v59, %v1952_v56  ;;  %v2036_v6 = vadd.f32 %v2035_v54, %v1993_v62 }
 0x207   :  { %v1996_v63 = vpop.f32.mrf.mxu0 }
 0x208   :  { %v2039_v0 = vpop.f32.mrf.mxu1  ;;  %v1997_v1 = vadd.f32 %v1996_v63, %v1954_v60  ;;  %v2038_v3 = vadd.f32 %v2037_v47, %v1995_v61  ;;  %v2046_v14 = vmax.f32 %v2036_v6, 0.0 }
 0x209   :  { %v1998_v2 = vpop.f32.mrf.mxu0 }
 0x20a   :  { %v2040_v4 = vadd.f32 %v2039_v0, %v1997_v1  ;;  %v1999_v5 = vadd.f32 %v1998_v2, %v1956_v51  ;;  %v2041_v7 = vpop.f32.mrf.mxu1  ;;  %v2047_v12 = vmax.f32 %v2038_v3, 0.0 }
 0x20c   :  { %v2042_v10 = vadd.f32 %v2041_v7, %v1999_v5  ;;  %v2050_v11 = vmax.f32 %v2040_v4, 0.0 }
 0x20e   :  { %v2051_v13 = vmax.f32 %v2042_v10, 0.0  ;;  %v2054_v16 = vpack.c.bf16 %v2050_v11, %v2046_v14 }
 0x210   :  { %v2055_v15 = vpack.c.bf16 %v2051_v13, %v2047_v12 }
 0x212   :  { %2392 = vmatprep.mubr.bf16.mxu1 %v2055_v15 }
 0x213   :  { %2393 = vmatmul.mubr.bf16.vlgmr.msra.gmra.mxu1 %v2054_v16 }
 0x253   :  { %v2769_v17 = vpop.f32.mrf.mxu0 }
 0x255   :  { %v2770_v18 = vpop.f32.mrf.mxu0 }
 0x256   :  { %v2771_v22 = vadd.f32 %v2770_v18, %v2769_v17 }
 0x257   :  { %v2772_v19 = vpop.f32.mrf.mxu0 }
 0x258   :  { %v2354_v27 = vadd.f32 %v2771_v22, %v2720_v23 }
 0x259   :  { %v2773_v24 = vpop.f32.mrf.mxu0 }
 0x25a   :  { %v2774_v28 = vadd.f32 %v2773_v24, %v2772_v19 }
 0x25c   :  { %v2357_v33 = vadd.f32 %v2774_v28, %v2720_v23 }
 0x2d3   :  { %v2791_v25 = vpop.f32.mrf.mxu1 }
 0x2d5   :  { %v2792_v26 = vpop.f32.mrf.mxu1 }
 0x2d6   :  { %v2793_v29 = vadd.f32 %v2792_v26, %v2791_v25 }
 0x2d7   :  { %v2794_v30 = vpop.f32.mrf.mxu1 }
 0x2d8   :  { %v2395_v31 = vadd.f32 %v2793_v29, %v2354_v27 }
 0x2d9   :  { %v2795_v32 = vpop.f32.mrf.mxu1 }
 0x2da   :  { %2417 = vst [vmem:[#allocation11] sm:$0xff] %v2395_v31  ;;  %v2796_v34 = vadd.f32 %v2795_v32, %v2794_v30  ;;  %2401 = vrot.lane.b32.xlu0 %v2395_v31, %s3386_s11 }
 0x2dc   :  { %v2398_v35 = vadd.f32 %v2796_v34, %v2357_v33 }
 0x2de   :  { %2418 = vst [vmem:[#allocation11 + $0x8] sm:$0xff] %v2398_v35  ;;  %2403 = vrot.lane.b32.xlu0 %v2398_v35, %s3386_s11 }
 0x2df   :  { %3343 = shalt.err (!%p3340_p1)
}
 0x2e0   :  { %2432 = dma.vmem_to_hbm [thread:$0]  %s2427_s9, 256, %s3540_s6, [#allocation4], %s3393_s0, %s3393_s0, %s3394_s28   ;;  %v2405_v9 = vld [vmem:[#allocation10] sm:$0xff]  ;;  %v2406_v39 = vld [vmem:[#allocation10 + $0x8] sm:$0xff] }
 0x2e1   :  { %s3396_s11 = smov [#allocation12]  }
 0x2e2   :  { %s2438_s13 = sshll.u32 %s3396_s11, 4  ;;  %s2439_s13 = int_to_ptr.vmem [resolvable:$true] %s2438_s13 }
 0x2e3   :  { %s3352_s6 = scalar_lea.vmem %s2439_s13, 256  ;;  %p3357_p3 = scmp.lt.s32.totalorder %s2439_s13, %s2439_s13 }
 0x2e4   :  { %p3353_p2 = scmp.ne.s32.totalorder %s2439_s13, %s3352_s6  ;;  %p3358_p4 = scmp.lt.s32.totalorder %s3352_s6, %s3352_s6 }
 0x2e6   :  { %p3359_p5 = por %p3358_p4, %p3357_p3 }
 0x2e8   :  { %p3360_p6 = pnand %p3359_p5, %p3353_p2 }
 0x34c   :  { %v2402_v36 = vpop.permute.xlu0 %2401 }
 0x34d   :  { %v2407_v37 = vmul.f32 0.5, %v2402_v36 }
 0x34f   :  { %v2409_v38 = vmul.f32 1.442695, %v2407_v37 }
 0x350   :  { %v2404_v8 = vpop.permute.xlu0 %2403 }
 0x351   :  { %3228 = vpow2.f32 %v2409_v38  ;;  %v2408_v20 = vmul.f32 0.5, %v2404_v8 }
 0x353   :  { %v2411_v21 = vmul.f32 1.442695, %v2408_v20 }
 0x355   :  { %3230 = vpow2.f32 %v2411_v21 }
 0x35e   :  { %v3229_v53 = vpop.eup %3228 }
 0x35f   :  { %v2413_v55 = vmul.f32 %v3229_v53, %v2405_v9 }
 0x361   :  { %v2415_v41 = vadd.f32 %v2413_v55, %v2395_v31 }
 0x362   :  { %v3231_v43 = vpop.eup %3230 }
 0x363   :  { %v2414_v40 = vmul.f32 %v3231_v43, %v2406_v39  ;;  %2419 = vst [vmem:[#allocation12] sm:$0xff] %v2415_v41 }
 0x365   :  { %v2416_v42 = vadd.f32 %v2414_v40, %v2398_v35 }
 0x367   :  { %2420 = vst [vmem:[#allocation12 + $0x8] sm:$0xff] %v2416_v42 }
 0x368   :  { %3363 = shalt.err (!%p3360_p6)
}
 0x369   :  { %2444 = dma.vmem_to_hbm [thread:$0]  %s2439_s13, 256, %s3541_s7, [#allocation13], %s3393_s0, %s3393_s0, %s3394_s28  }
 0x36a   :  { %3378 = dma.done.wait [#allocation4], 256  }
 0x36b   :  { %3379 = vsyncadd [#allocation4], 4294967040 }
 0x36c   :  { %3380 = dma.done.wait [#allocation13], 256  }
 0x36d   :  { %3381 = vsyncadd [#allocation13], 4294967040 }
 0x36e   :  { %2451 = vsyncpa [#allocation3], 1 }
 0x36f   :  { %2452 = vsyncpa [#allocation6], 1 }
 0x370   :  { %2453 = vsyncpa [#allocation9], 1 }
 0x371   :  { %2454 = vsyncpa [#allocation4], 1 }
 0x372   :  { %2455 = vsyncpa [#allocation13], 1 }

</bundles_post_ra>
